<compile_context>
chip_gen: v6e
topology: v6e:2x2x1
jax: 0.10.0
libtpu: 0.0.40
codegen_flags: <defaults>
</compile_context>

<pallas_src>
import functools

import jax
import jax.numpy as jnp
from jax.experimental import pallas as pl
from jax.experimental.pallas import tpu as pltpu


# ---------------------------------------------------------------------------
# Fused kernel.  Grid = (C2 // CPC,) over fc1 weight chunks ("arbitrary").
#   x9_ref  : (B, 16, L1)        im2col'd input (rows 9..15 zero), f32
#   w1_ref  : (C1, 16)           conv1 weights, col t = kh*3+kw (cols 9..15 zero)
#   b1_ref  : (C1, 1)
#   w2_ref  : (C2, 9*C1) bf16    conv2 weights, col = t*C1 + ci
#   b2_ref  : (C2, 1)
#   wf1_ref : (CPC, L2, HID) bf16  streamed fc1 chunk (pre-permuted, zero-padded)
#   bf1_ref : (1, HID)
#   wf2_ref : (1, HID)
#   bf2_ref : (1, 1)
#   o_ref   : (B, 1)
#   h2_scr  : (C2, B, L2) VMEM f32   conv2 output, whole batch (persists)
#   acc_scr : (B, HID)    VMEM f32   fc1 accumulator (bias folded at init)
# ---------------------------------------------------------------------------
def _audio_fused_kernel(x9_ref, w1_ref, b1_ref, w2_ref, b2_ref,
                        wf1_ref, bf1_ref, wf2_ref, bf2_ref,
                        o_ref, h2_scr, acc_scr,
                        *, B, W, L1, L2, C1, C2, HID, CPC):
    c = pl.program_id(0)
    last = pl.num_programs(0) - 1

    # ---- step 0: conv1 + conv2 (+ReLU) for the whole batch; init fc1 acc ----
    @pl.when(c == 0)
    def _():
        acc_scr[...] = jnp.broadcast_to(bf1_ref[...], (B, HID))   # fold fc1 bias
        tap_shifts = [kh * W + kw for kh in range(3) for kw in range(3)]
        for b in range(B):                        # B small & static -> unrolled
            # conv1 on the MXU: (C1,16) @ (16,L1); zero-padded taps contribute 0.
            h1 = jnp.dot(w1_ref[...], x9_ref[b],
                         preferred_element_type=jnp.float32)
            h1 = jnp.maximum(h1 + b1_ref[...], 0.0)               # (C1, L1) f32
            # conv2: 9 shift-and-matmul taps fused into ONE K=144 contraction.
            stk = jnp.concatenate([h1[:, s:s + L2] for s in tap_shifts],
                                  axis=0)                         # (9*C1, L2)
            h2 = jnp.dot(w2_ref[...], stk.astype(jnp.bfloat16),
                         preferred_element_type=jnp.float32)      # (C2, L2) f32
            h2 = jnp.maximum(h2 + b2_ref[...], 0.0)
            h2_scr[:, b:b + 1, :] = h2[:, None, :]

    # ---- every step: this chunk's CPC channels of the fc1 reduction,
    #      batched over B, bf16 MXU operands / f32 accumulation. --------------
    for j in range(CPC):
        lhs = h2_scr[c * CPC + j]                                 # (B, L2) f32
        acc_scr[...] += jnp.dot(lhs.astype(jnp.bfloat16), wf1_ref[j],
                                preferred_element_type=jnp.float32)

    # ---- last step: fc2 (out dim 1 -> lane reduction, no MXU) + sigmoid -----
    @pl.when(c == last)
    def _():
        hfc = acc_scr[...]                                        # (B, HID)
        y = jnp.sum(hfc * wf2_ref[...], axis=-1, keepdims=True) + bf2_ref[...]
        o_ref[...] = jax.nn.sigmoid(y)


# ---------------------------------------------------------------------------
# Wrapper: one pallas_call; only wf1 moves block-by-block, everything else is
# resident for the whole (tiny) grid.  VMEM footprint << default scoped limit.
# ---------------------------------------------------------------------------
def audio_forward(x_nchw, kp, *, cpc=4):
    B, Cin, H, W = x_nchw.shape
    assert Cin == 1, "AudioModel.conv1 expects a single input channel"
    C1, T = kp["w1"].shape                 # T = padded tap rows (16)
    C2 = kp["w2"].shape[0]
    HID = kp["bf1"].shape[1]
    L1 = (H - 2) * W - 2                   # conv1 lanes on the W-strided grid
    L2 = (H - 4) * W - 4                   # conv2 lanes on the W-strided grid
    assert C2 % cpc == 0
    n_chunks = C2 // cpc

    # Host-side (in-jit) im2col of the 1-channel input: row t = kh*3+kw is the
    # input shifted by kh*W+kw; rows 9..15 are zero so conv1's MXU K is 16.
    xf = x_nchw.reshape(B, H * W)
    rows = [xf[:, kh * W + kw: kh * W + kw + L1]
            for kh in range(3) for kw in range(3)]
    x9 = jnp.stack(rows, axis=1)                                   # (B, 9, L1)
    x9 = jnp.concatenate([x9, jnp.zeros((B, T - 9, L1), x9.dtype)], axis=1)

    kern = functools.partial(_audio_fused_kernel, B=B, W=W, L1=L1, L2=L2,
                             C1=C1, C2=C2, HID=HID, CPC=cpc)
    return pl.pallas_call(
        kern,
        out_shape=jax.ShapeDtypeStruct((B, 1), jnp.float32),
        grid=(n_chunks,),
        in_specs=[
            pl.BlockSpec((B, T, L1), lambda c: (0, 0, 0)),
            pl.BlockSpec((C1, T), lambda c: (0, 0)),
            pl.BlockSpec((C1, 1), lambda c: (0, 0)),
            pl.BlockSpec((C2, 9 * C1), lambda c: (0, 0)),
            pl.BlockSpec((C2, 1), lambda c: (0, 0)),
            pl.BlockSpec((cpc, L2, HID), lambda c: (c, 0, 0)),   # streamed bf16
            pl.BlockSpec((1, HID), lambda c: (0, 0)),
            pl.BlockSpec((1, HID), lambda c: (0, 0)),
            pl.BlockSpec((1, 1), lambda c: (0, 0)),
        ],
        out_specs=pl.BlockSpec((B, 1), lambda c: (0, 0)),
        scratch_shapes=[
            pltpu.VMEM((C2, B, L2), jnp.float32),   # conv2 output, whole batch
            pltpu.VMEM((B, HID), jnp.float32),      # fc1 accumulator
        ],
        compiler_params=pltpu.CompilerParams(
            dimension_semantics=("arbitrary",)),    # fc1 reduction axis
    )(x9, kp["w1"], kp["b1"], kp["w2"], kp["b2"],
      kp["wf1"], kp["bf1"], kp["wf2"], kp["bf2"])


# ---------------------------------------------------------------------------
# One-time host-side conversion of PyTorch-layout parameters to the layouts
# the kernel consumes (NCHW flatten baked into fc1; wf1/w2 stored bf16).
# ---------------------------------------------------------------------------
def prepare_params(p, H, W):
    C1 = p["conv1_w"].shape[0]
    C2 = p["conv2_w"].shape[0]
    HID = p["fc1_b"].shape[0]
    Ho2, Wo2 = H - 4, W - 4
    L2 = (H - 4) * W - 4
    T = 16   # conv1 tap rows padded 9 -> 16 for an aligned MXU K

    # conv1: (C1, 1, 3, 3) -> (C1, 16), column t = kh*3 + kw, cols 9..15 zero.
    w1 = p["conv1_w"].reshape(C1, 9)
    w1 = jnp.concatenate([w1, jnp.zeros((C1, T - 9), w1.dtype)], axis=1)
    b1 = p["conv1_b"].reshape(C1, 1)

    # conv2: (C2, C1, 3, 3) -> (C2, 9*C1), column = t*C1 + ci, t = kh*3 + kw
    # (matches the in-kernel sublane stacking of the 9 shifted h1 views).
    w2 = jnp.transpose(p["conv2_w"], (0, 2, 3, 1)).reshape(C2, 9 * C1)
    w2 = w2.astype(jnp.bfloat16)
    b2 = p["conv2_b"].reshape(C2, 1)

    # fc1: torch weight is (HID, C2*Ho2*Wo2) over the NCHW flatten (c, i, j).
    # Re-index it onto the kernel's W-strided spatial grid p = i*W + j, zero
    # the j >= Wo2 "garbage" (row-wrap) columns, store bf16 (dominant HBM
    # buffer; it is only ever an MXU operand, accumulation stays f32).
    wf = p["fc1_w"].reshape(HID, C2, Ho2, Wo2)
    wf = jnp.transpose(wf, (1, 2, 3, 0))                      # (C2, Ho2, Wo2, HID)
    wf = jnp.pad(wf, ((0, 0), (0, 0), (0, W - Wo2), (0, 0)))  # (C2, Ho2, W, HID)
    wf = wf.reshape(C2, Ho2 * W, HID)[:, :L2, :]              # (C2, L2, HID)
    wf1 = wf.astype(jnp.bfloat16)
    bf1 = p["fc1_b"].reshape(1, HID)
    wf2 = p["fc2_w"].reshape(1, HID)
    bf2 = p["fc2_b"].reshape(1, 1)
    return dict(w1=w1, b1=b1, w2=w2, b2=b2, wf1=wf1, bf1=bf1, wf2=wf2, bf2=bf2)


# ---------------------------------------------------------------------------
# Pure-JAX f32 reference (mirrors the PyTorch module) for correctness check.
# ---------------------------------------------------------------------------
def reference_forward(x_nchw, p):
    dn = ("NCHW", "OIHW", "NCHW")
    hi = jax.lax.Precision.HIGHEST
    y = jax.lax.conv_general_dilated(x_nchw, p["conv1_w"], (1, 1), "VALID",
                                     dimension_numbers=dn, precision=hi)
    y = jnp.maximum(y + p["conv1_b"][None, :, None, None], 0.0)
    y = jax.lax.conv_general_dilated(y, p["conv2_w"], (1, 1), "VALID",
                                     dimension_numbers=dn, precision=hi)
    y = jnp.maximum(y + p["conv2_b"][None, :, None, None], 0.0)
    flat = y.reshape(y.shape[0], -1)                          # (C, H, W) order
    h = jnp.dot(flat, p["fc1_w"].T, precision=hi) + p["fc1_b"]
    o = jnp.dot(h, p["fc2_w"].T, precision=hi) + p["fc2_b"]
    return jax.nn.sigmoid(o)


def init_params(key, H, W):
    # PyTorch-layout parameters (conv: (Cout, Cin, kh, kw); linear: (out, in)).
    flat_dim = 16 * (H - 4) * (W - 4)   # lazily-built fc1 input dim in the spec
    ks = jax.random.split(key, 8)
    s = 0.05
    return {
        "conv1_w": s * jax.random.normal(ks[0], (16, 1, 3, 3), jnp.float32),
        "conv1_b": s * jax.random.normal(ks[1], (16,), jnp.float32),
        "conv2_w": s * jax.random.normal(ks[2], (16, 16, 3, 3), jnp.float32),
        "conv2_b": s * jax.random.normal(ks[3], (16,), jnp.float32),
        "fc1_w":   s * jax.random.normal(ks[4], (128, flat_dim), jnp.float32),
        "fc1_b":   s * jax.random.normal(ks[5], (128,), jnp.float32),
        "fc2_w":   s * jax.random.normal(ks[6], (1, 128), jnp.float32),
        "fc2_b":   s * jax.random.normal(ks[7], (1,), jnp.float32),
    }


if __name__ == "__main__":
    key = jax.random.PRNGKey(0)
    k_x, k_p = jax.random.split(key)

    B, C, H, W = 2, 1, 16, 16                 # small "spectrogram" input
    x = jax.random.normal(k_x, (B, C, H, W), jnp.float32)
    params = init_params(k_p, H, W)

    kparams = prepare_params(params, H, W)    # one-time weight re-layout (bf16)
    fwd = jax.jit(audio_forward)
    out = fwd(x, kparams)
    jax.block_until_ready(out)

    ref = reference_forward(x, params)
    assert out.shape == (B, 1), out.shape
    max_err = float(jnp.max(jnp.abs(out - ref)))
    # bf16 weight storage on the K=3008 fc1 reduction: loosen tolerance vs f32.
    assert max_err < 5e-3, f"kernel/reference mismatch: {max_err}"
    assert bool(jnp.all((out >= 0.0) & (out <= 1.0))), "sigmoid range violated"
    print("KERNEL_OK")
</pallas_src>

<mosaic_0001>
module attributes {stable_mosaic.version = 11 : i64} {
  func.func @_audio_fused_kernel(%arg0: i32, %arg1: memref<2x16x222xf32, #tpu.memory_space<vmem>>, %arg2: memref<16x16xf32, #tpu.memory_space<vmem>>, %arg3: memref<16x1xf32, #tpu.memory_space<vmem>>, %arg4: memref<16x144xbf16, #tpu.memory_space<vmem>>, %arg5: memref<16x1xf32, #tpu.memory_space<vmem>>, %arg6: memref<4x188x128xbf16, #tpu.memory_space<vmem>>, %arg7: memref<1x128xf32, #tpu.memory_space<vmem>>, %arg8: memref<1x128xf32, #tpu.memory_space<vmem>>, %arg9: memref<1x1xf32, #tpu.memory_space<vmem>>, %arg10: memref<2x1xf32, #tpu.memory_space<vmem>>, %arg11: memref<16x2x188xf32, #tpu.memory_space<vmem>>, %arg12: memref<2x128xf32, #tpu.memory_space<vmem>>) attributes {dimension_semantics = [#tpu.dimension_semantics<arbitrary>], iteration_bounds = array<i64: 4>, scalar_prefetch = 0 : i64, scratch_operands = 2 : i64, tpu.core_type = #tpu.core_type<tc>, window_params = [{pipeline_mode = #tpu.pipeline_mode<synchronous>, transform_indices = @transform_0, window_bounds = array<i64: 2, 16, 222>}, {pipeline_mode = #tpu.pipeline_mode<synchronous>, transform_indices = @transform_1, window_bounds = array<i64: 16, 16>}, {pipeline_mode = #tpu.pipeline_mode<synchronous>, transform_indices = @transform_2, window_bounds = array<i64: 16, 1>}, {pipeline_mode = #tpu.pipeline_mode<synchronous>, transform_indices = @transform_3, window_bounds = array<i64: 16, 144>}, {pipeline_mode = #tpu.pipeline_mode<synchronous>, transform_indices = @transform_4, window_bounds = array<i64: 16, 1>}, {transform_indices = @transform_5, window_bounds = array<i64: 4, 188, 128>}, {pipeline_mode = #tpu.pipeline_mode<synchronous>, transform_indices = @transform_6, window_bounds = array<i64: 1, 128>}, {pipeline_mode = #tpu.pipeline_mode<synchronous>, transform_indices = @transform_7, window_bounds = array<i64: 1, 128>}, {pipeline_mode = #tpu.pipeline_mode<synchronous>, transform_indices = @transform_8, window_bounds = array<i64: 1, 1>}, {pipeline_mode = #tpu.pipeline_mode<synchronous>, transform_indices = @transform_9, window_bounds = array<i64: 2, 1>}]} {
    %c0_i32 = arith.constant 0 : i32
    %0 = arith.cmpi eq, %arg0, %c0_i32 : i32
    %1 = arith.extui %0 : i1 to i32
    %c0_i32_0 = arith.constant 0 : i32
    %2 = arith.cmpi ne, %1, %c0_i32_0 : i32
    scf.if %2 {
      %c0_42 = arith.constant 0 : index
      %c0_43 = arith.constant 0 : index
      %54 = vector.load %arg7[%c0_42, %c0_43] : memref<1x128xf32, #tpu.memory_space<vmem>>, vector<1x128xf32>
      %55 = vector.shape_cast %54 : vector<1x128xf32> to vector<1x128xf32>
      %56 = vector.broadcast %55 : vector<1x128xf32> to vector<2x128xf32>
      %c0_44 = arith.constant 0 : index
      %c0_45 = arith.constant 0 : index
      %57 = vector.load %arg12[%c0_44, %c0_45] : memref<2x128xf32, #tpu.memory_space<vmem>>, vector<2x128xf32>
      tpu.vector_store %arg12[%c0_44, %c0_45], %56 {strides = array<i32>} : memref<2x128xf32, #tpu.memory_space<vmem>>, vector<2x128xf32>,
      %c0_46 = arith.constant 0 : index
      %c0_47 = arith.constant 0 : index
      %58 = vector.load %arg2[%c0_46, %c0_47] : memref<16x16xf32, #tpu.memory_space<vmem>>, vector<16x16xf32>
      %c0_48 = arith.constant 0 : index
      %c0_49 = arith.constant 0 : index
      %c0_50 = arith.constant 0 : index
      %59 = vector.load %arg1[%c0_48, %c0_49, %c0_50] : memref<2x16x222xf32, #tpu.memory_space<vmem>>, vector<1x16x222xf32>
      %60 = vector.shape_cast %59 : vector<1x16x222xf32> to vector<16x222xf32>
      %cst_51 = arith.constant dense<0.000000e+00> : vector<16x222xf32>
      %61 = tpu.matmul %58, %60, %cst_51 {dimension_numbers = #tpu.dot_dimension_numbers<[1], [0], [0], [1], [0, 0, 1, 1], [], []>} : vector<16x16xf32>, vector<16x222xf32>, vector<16x222xf32> -> vector<16x222xf32>
      %c0_52 = arith.constant 0 : index
      %c0_53 = arith.constant 0 : index
      %62 = vector.load %arg3[%c0_52, %c0_53] : memref<16x1xf32, #tpu.memory_space<vmem>>, vector<16x1xf32>
      %63 = vector.broadcast %62 : vector<16x1xf32> to vector<16x222xf32>
      %64 = arith.addf %61, %63 : vector<16x222xf32>
      %cst_54 = arith.constant 0.000000e+00 : f32
      %65 = vector.broadcast %cst_54 : f32 to vector<16x222xf32>
      %66 = arith.maximumf %64, %65 : vector<16x222xf32>
      %67 = vector.extract_strided_slice %66 {offsets = [0, 0], sizes = [16, 188], strides = [1, 1]} : vector<16x222xf32> to vector<16x188xf32>
      %68 = vector.extract_strided_slice %66 {offsets = [0, 1], sizes = [16, 188], strides = [1, 1]} : vector<16x222xf32> to vector<16x188xf32>
      %69 = vector.extract_strided_slice %66 {offsets = [0, 2], sizes = [16, 188], strides = [1, 1]} : vector<16x222xf32> to vector<16x188xf32>
      %70 = vector.extract_strided_slice %66 {offsets = [0, 16], sizes = [16, 188], strides = [1, 1]} : vector<16x222xf32> to vector<16x188xf32>
      %71 = vector.extract_strided_slice %66 {offsets = [0, 17], sizes = [16, 188], strides = [1, 1]} : vector<16x222xf32> to vector<16x188xf32>
      %72 = vector.extract_strided_slice %66 {offsets = [0, 18], sizes = [16, 188], strides = [1, 1]} : vector<16x222xf32> to vector<16x188xf32>
      %73 = vector.extract_strided_slice %66 {offsets = [0, 32], sizes = [16, 188], strides = [1, 1]} : vector<16x222xf32> to vector<16x188xf32>
      %74 = vector.extract_strided_slice %66 {offsets = [0, 33], sizes = [16, 188], strides = [1, 1]} : vector<16x222xf32> to vector<16x188xf32>
      %75 = vector.extract_strided_slice %66 {offsets = [0, 34], sizes = [16, 188], strides = [1, 1]} : vector<16x222xf32> to vector<16x188xf32>
      %76 = tpu.concatenate %67, %68, %69, %70, %71, %72, %73, %74, %75 in 0 : vector<16x188xf32>, vector<16x188xf32>, vector<16x188xf32>, vector<16x188xf32>, vector<16x188xf32>, vector<16x188xf32>, vector<16x188xf32>, vector<16x188xf32>, vector<16x188xf32> -> vector<144x188xf32>
      %c0_55 = arith.constant 0 : index
      %c0_56 = arith.constant 0 : index
      %77 = vector.load %arg4[%c0_55, %c0_56] : memref<16x144xbf16, #tpu.memory_space<vmem>>, vector<16x144xbf16>
      %78 = arith.truncf %76 : vector<144x188xf32> to vector<144x188xbf16>
      %cst_57 = arith.constant dense<0.000000e+00> : vector<16x188xf32>
      %79 = tpu.matmul %77, %78, %cst_57 {dimension_numbers = #tpu.dot_dimension_numbers<[1], [0], [0], [1], [0, 0, 1, 1], [], []>} : vector<16x144xbf16>, vector<144x188xbf16>, vector<16x188xf32> -> vector<16x188xf32>
      %c0_58 = arith.constant 0 : index
      %c0_59 = arith.constant 0 : index
      %80 = vector.load %arg5[%c0_58, %c0_59] : memref<16x1xf32, #tpu.memory_space<vmem>>, vector<16x1xf32>
      %81 = vector.broadcast %80 : vector<16x1xf32> to vector<16x188xf32>
      %82 = arith.addf %79, %81 : vector<16x188xf32>
      %cst_60 = arith.constant 0.000000e+00 : f32
      %83 = vector.broadcast %cst_60 : f32 to vector<16x188xf32>
      %84 = arith.maximumf %82, %83 : vector<16x188xf32>
      %85 = vector.shape_cast %84 : vector<16x188xf32> to vector<16x1x188xf32>
      %c0_61 = arith.constant 0 : index
      %c0_62 = arith.constant 0 : index
      %c0_63 = arith.constant 0 : index
      %86 = vector.load %arg11[%c0_61, %c0_62, %c0_63] : memref<16x2x188xf32, #tpu.memory_space<vmem>>, vector<16x1x188xf32>
      tpu.vector_store %arg11[%c0_61, %c0_62, %c0_63], %85 {strides = array<i32>} : memref<16x2x188xf32, #tpu.memory_space<vmem>>, vector<16x1x188xf32>,
      %c0_64 = arith.constant 0 : index
      %c0_65 = arith.constant 0 : index
      %87 = vector.load %arg2[%c0_64, %c0_65] : memref<16x16xf32, #tpu.memory_space<vmem>>, vector<16x16xf32>
      %c1_66 = arith.constant 1 : index
      %c0_67 = arith.constant 0 : index
      %c0_68 = arith.constant 0 : index
      %88 = vector.load %arg1[%c1_66, %c0_67, %c0_68] : memref<2x16x222xf32, #tpu.memory_space<vmem>>, vector<1x16x222xf32>
      %89 = vector.shape_cast %88 : vector<1x16x222xf32> to vector<16x222xf32>
      %cst_69 = arith.constant dense<0.000000e+00> : vector<16x222xf32>
      %90 = tpu.matmul %87, %89, %cst_69 {dimension_numbers = #tpu.dot_dimension_numbers<[1], [0], [0], [1], [0, 0, 1, 1], [], []>} : vector<16x16xf32>, vector<16x222xf32>, vector<16x222xf32> -> vector<16x222xf32>
      %c0_70 = arith.constant 0 : index
      %c0_71 = arith.constant 0 : index
      %91 = vector.load %arg3[%c0_70, %c0_71] : memref<16x1xf32, #tpu.memory_space<vmem>>, vector<16x1xf32>
      %92 = vector.broadcast %91 : vector<16x1xf32> to vector<16x222xf32>
      %93 = arith.addf %90, %92 : vector<16x222xf32>
      %cst_72 = arith.constant 0.000000e+00 : f32
      %94 = vector.broadcast %cst_72 : f32 to vector<16x222xf32>
      %95 = arith.maximumf %93, %94 : vector<16x222xf32>
      %96 = vector.extract_strided_slice %95 {offsets = [0, 0], sizes = [16, 188], strides = [1, 1]} : vector<16x222xf32> to vector<16x188xf32>
      %97 = vector.extract_strided_slice %95 {offsets = [0, 1], sizes = [16, 188], strides = [1, 1]} : vector<16x222xf32> to vector<16x188xf32>
      %98 = vector.extract_strided_slice %95 {offsets = [0, 2], sizes = [16, 188], strides = [1, 1]} : vector<16x222xf32> to vector<16x188xf32>
      %99 = vector.extract_strided_slice %95 {offsets = [0, 16], sizes = [16, 188], strides = [1, 1]} : vector<16x222xf32> to vector<16x188xf32>
      %100 = vector.extract_strided_slice %95 {offsets = [0, 17], sizes = [16, 188], strides = [1, 1]} : vector<16x222xf32> to vector<16x188xf32>
      %101 = vector.extract_strided_slice %95 {offsets = [0, 18], sizes = [16, 188], strides = [1, 1]} : vector<16x222xf32> to vector<16x188xf32>
      %102 = vector.extract_strided_slice %95 {offsets = [0, 32], sizes = [16, 188], strides = [1, 1]} : vector<16x222xf32> to vector<16x188xf32>
      %103 = vector.extract_strided_slice %95 {offsets = [0, 33], sizes = [16, 188], strides = [1, 1]} : vector<16x222xf32> to vector<16x188xf32>
      %104 = vector.extract_strided_slice %95 {offsets = [0, 34], sizes = [16, 188], strides = [1, 1]} : vector<16x222xf32> to vector<16x188xf32>
      %105 = tpu.concatenate %96, %97, %98, %99, %100, %101, %102, %103, %104 in 0 : vector<16x188xf32>, vector<16x188xf32>, vector<16x188xf32>, vector<16x188xf32>, vector<16x188xf32>, vector<16x188xf32>, vector<16x188xf32>, vector<16x188xf32>, vector<16x188xf32> -> vector<144x188xf32>
      %c0_73 = arith.constant 0 : index
      %c0_74 = arith.constant 0 : index
      %106 = vector.load %arg4[%c0_73, %c0_74] : memref<16x144xbf16, #tpu.memory_space<vmem>>, vector<16x144xbf16>
      %107 = arith.truncf %105 : vector<144x188xf32> to vector<144x188xbf16>
      %cst_75 = arith.constant dense<0.000000e+00> : vector<16x188xf32>
      %108 = tpu.matmul %106, %107, %cst_75 {dimension_numbers = #tpu.dot_dimension_numbers<[1], [0], [0], [1], [0, 0, 1, 1], [], []>} : vector<16x144xbf16>, vector<144x188xbf16>, vector<16x188xf32> -> vector<16x188xf32>
      %c0_76 = arith.constant 0 : index
      %c0_77 = arith.constant 0 : index
      %109 = vector.load %arg5[%c0_76, %c0_77] : memref<16x1xf32, #tpu.memory_space<vmem>>, vector<16x1xf32>
      %110 = vector.broadcast %109 : vector<16x1xf32> to vector<16x188xf32>
      %111 = arith.addf %108, %110 : vector<16x188xf32>
      %cst_78 = arith.constant 0.000000e+00 : f32
      %112 = vector.broadcast %cst_78 : f32 to vector<16x188xf32>
      %113 = arith.maximumf %111, %112 : vector<16x188xf32>
      %114 = vector.shape_cast %113 : vector<16x188xf32> to vector<16x1x188xf32>
      %c0_79 = arith.constant 0 : index
      %c1_80 = arith.constant 1 : index
      %c0_81 = arith.constant 0 : index
      %115 = vector.load %arg11[%c0_79, %c1_80, %c0_81] : memref<16x2x188xf32, #tpu.memory_space<vmem>>, vector<16x1x188xf32>
      tpu.vector_store %arg11[%c0_79, %c1_80, %c0_81], %114 {strides = array<i32>} : memref<16x2x188xf32, #tpu.memory_space<vmem>>, vector<16x1x188xf32>,
    } else {
    }
    %c4_i32 = arith.constant 4 : i32
    %3 = arith.muli %arg0, %c4_i32 : i32
    %c0_i32_1 = arith.constant 0 : i32
    %4 = arith.addi %3, %c0_i32_1 : i32
    %5 = arith.index_cast %4 : i32 to index
    %c0 = arith.constant 0 : index
    %c0_2 = arith.constant 0 : index
    %6 = vector.load %arg11[%5, %c0, %c0_2] : memref<16x2x188xf32, #tpu.memory_space<vmem>>, vector<1x2x188xf32>
    %7 = vector.shape_cast %6 : vector<1x2x188xf32> to vector<2x188xf32>
    %c0_3 = arith.constant 0 : index
    %c0_4 = arith.constant 0 : index
    %8 = vector.load %arg12[%c0_3, %c0_4] : memref<2x128xf32, #tpu.memory_space<vmem>>, vector<2x128xf32>
    %9 = arith.truncf %7 : vector<2x188xf32> to vector<2x188xbf16>
    %c0_5 = arith.constant 0 : index
    %c0_6 = arith.constant 0 : index
    %c0_7 = arith.constant 0 : index
    %10 = vector.load %arg6[%c0_5, %c0_6, %c0_7] : memref<4x188x128xbf16, #tpu.memory_space<vmem>>, vector<1x188x128xbf16>
    %11 = vector.shape_cast %10 : vector<1x188x128xbf16> to vector<188x128xbf16>
    %cst = arith.constant dense<0.000000e+00> : vector<2x128xf32>
    %12 = tpu.matmul %9, %11, %cst {dimension_numbers = #tpu.dot_dimension_numbers<[1], [0], [0], [1], [0, 0, 1, 1], [], []>} : vector<2x188xbf16>, vector<188x128xbf16>, vector<2x128xf32> -> vector<2x128xf32>
    %13 = arith.addf %8, %12 : vector<2x128xf32>
    %c0_8 = arith.constant 0 : index
    %c0_9 = arith.constant 0 : index
    %14 = vector.load %arg12[%c0_8, %c0_9] : memref<2x128xf32, #tpu.memory_space<vmem>>, vector<2x128xf32>
    tpu.vector_store %arg12[%c0_8, %c0_9], %13 {strides = array<i32>} : memref<2x128xf32, #tpu.memory_space<vmem>>, vector<2x128xf32>,
    %c4_i32_10 = arith.constant 4 : i32
    %15 = arith.muli %arg0, %c4_i32_10 : i32
    %c1_i32 = arith.constant 1 : i32
    %16 = arith.addi %15, %c1_i32 : i32
    %17 = arith.index_cast %16 : i32 to index
    %c0_11 = arith.constant 0 : index
    %c0_12 = arith.constant 0 : index
    %18 = vector.load %arg11[%17, %c0_11, %c0_12] : memref<16x2x188xf32, #tpu.memory_space<vmem>>, vector<1x2x188xf32>
    %19 = vector.shape_cast %18 : vector<1x2x188xf32> to vector<2x188xf32>
    %c0_13 = arith.constant 0 : index
    %c0_14 = arith.constant 0 : index
    %20 = vector.load %arg12[%c0_13, %c0_14] : memref<2x128xf32, #tpu.memory_space<vmem>>, vector<2x128xf32>
    %21 = arith.truncf %19 : vector<2x188xf32> to vector<2x188xbf16>
    %c1 = arith.constant 1 : index
    %c0_15 = arith.constant 0 : index
    %c0_16 = arith.constant 0 : index
    %22 = vector.load %arg6[%c1, %c0_15, %c0_16] : memref<4x188x128xbf16, #tpu.memory_space<vmem>>, vector<1x188x128xbf16>
    %23 = vector.shape_cast %22 : vector<1x188x128xbf16> to vector<188x128xbf16>
    %cst_17 = arith.constant dense<0.000000e+00> : vector<2x128xf32>
    %24 = tpu.matmul %21, %23, %cst_17 {dimension_numbers = #tpu.dot_dimension_numbers<[1], [0], [0], [1], [0, 0, 1, 1], [], []>} : vector<2x188xbf16>, vector<188x128xbf16>, vector<2x128xf32> -> vector<2x128xf32>
    %25 = arith.addf %20, %24 : vector<2x128xf32>
    %c0_18 = arith.constant 0 : index
    %c0_19 = arith.constant 0 : index
    %26 = vector.load %arg12[%c0_18, %c0_19] : memref<2x128xf32, #tpu.memory_space<vmem>>, vector<2x128xf32>
    tpu.vector_store %arg12[%c0_18, %c0_19], %25 {strides = array<i32>} : memref<2x128xf32, #tpu.memory_space<vmem>>, vector<2x128xf32>,
    %c4_i32_20 = arith.constant 4 : i32
    %27 = arith.muli %arg0, %c4_i32_20 : i32
    %c2_i32 = arith.constant 2 : i32
    %28 = arith.addi %27, %c2_i32 : i32
    %29 = arith.index_cast %28 : i32 to index
    %c0_21 = arith.constant 0 : index
    %c0_22 = arith.constant 0 : index
    %30 = vector.load %arg11[%29, %c0_21, %c0_22] : memref<16x2x188xf32, #tpu.memory_space<vmem>>, vector<1x2x188xf32>
    %31 = vector.shape_cast %30 : vector<1x2x188xf32> to vector<2x188xf32>
    %c0_23 = arith.constant 0 : index
    %c0_24 = arith.constant 0 : index
    %32 = vector.load %arg12[%c0_23, %c0_24] : memref<2x128xf32, #tpu.memory_space<vmem>>, vector<2x128xf32>
    %33 = arith.truncf %31 : vector<2x188xf32> to vector<2x188xbf16>
    %c2 = arith.constant 2 : index
    %c0_25 = arith.constant 0 : index
    %c0_26 = arith.constant 0 : index
    %34 = vector.load %arg6[%c2, %c0_25, %c0_26] : memref<4x188x128xbf16, #tpu.memory_space<vmem>>, vector<1x188x128xbf16>
    %35 = vector.shape_cast %34 : vector<1x188x128xbf16> to vector<188x128xbf16>
    %cst_27 = arith.constant dense<0.000000e+00> : vector<2x128xf32>
    %36 = tpu.matmul %33, %35, %cst_27 {dimension_numbers = #tpu.dot_dimension_numbers<[1], [0], [0], [1], [0, 0, 1, 1], [], []>} : vector<2x188xbf16>, vector<188x128xbf16>, vector<2x128xf32> -> vector<2x128xf32>
    %37 = arith.addf %32, %36 : vector<2x128xf32>
    %c0_28 = arith.constant 0 : index
    %c0_29 = arith.constant 0 : index
    %38 = vector.load %arg12[%c0_28, %c0_29] : memref<2x128xf32, #tpu.memory_space<vmem>>, vector<2x128xf32>
    tpu.vector_store %arg12[%c0_28, %c0_29], %37 {strides = array<i32>} : memref<2x128xf32, #tpu.memory_space<vmem>>, vector<2x128xf32>,
    %c4_i32_30 = arith.constant 4 : i32
    %39 = arith.muli %arg0, %c4_i32_30 : i32
    %c3_i32 = arith.constant 3 : i32
    %40 = arith.addi %39, %c3_i32 : i32
    %41 = arith.index_cast %40 : i32 to index
    %c0_31 = arith.constant 0 : index
    %c0_32 = arith.constant 0 : index
    %42 = vector.load %arg11[%41, %c0_31, %c0_32] : memref<16x2x188xf32, #tpu.memory_space<vmem>>, vector<1x2x188xf32>
    %43 = vector.shape_cast %42 : vector<1x2x188xf32> to vector<2x188xf32>
    %c0_33 = arith.constant 0 : index
    %c0_34 = arith.constant 0 : index
    %44 = vector.load %arg12[%c0_33, %c0_34] : memref<2x128xf32, #tpu.memory_space<vmem>>, vector<2x128xf32>
    %45 = arith.truncf %43 : vector<2x188xf32> to vector<2x188xbf16>
    %c3 = arith.constant 3 : index
    %c0_35 = arith.constant 0 : index
    %c0_36 = arith.constant 0 : index
    %46 = vector.load %arg6[%c3, %c0_35, %c0_36] : memref<4x188x128xbf16, #tpu.memory_space<vmem>>, vector<1x188x128xbf16>
    %47 = vector.shape_cast %46 : vector<1x188x128xbf16> to vector<188x128xbf16>
    %cst_37 = arith.constant dense<0.000000e+00> : vector<2x128xf32>
    %48 = tpu.matmul %45, %47, %cst_37 {dimension_numbers = #tpu.dot_dimension_numbers<[1], [0], [0], [1], [0, 0, 1, 1], [], []>} : vector<2x188xbf16>, vector<188x128xbf16>, vector<2x128xf32> -> vector<2x128xf32>
    %49 = arith.addf %44, %48 : vector<2x128xf32>
    %c0_38 = arith.constant 0 : index
    %c0_39 = arith.constant 0 : index
    %50 = vector.load %arg12[%c0_38, %c0_39] : memref<2x128xf32, #tpu.memory_space<vmem>>, vector<2x128xf32>
    tpu.vector_store %arg12[%c0_38, %c0_39], %49 {strides = array<i32>} : memref<2x128xf32, #tpu.memory_space<vmem>>, vector<2x128xf32>,
    %c3_i32_40 = arith.constant 3 : i32
    %51 = arith.cmpi eq, %arg0, %c3_i32_40 : i32
    %52 = arith.extui %51 : i1 to i32
    %c0_i32_41 = arith.constant 0 : i32
    %53 = arith.cmpi ne, %52, %c0_i32_41 : i32
    scf.if %53 {
      %c0_42 = arith.constant 0 : index
      %c0_43 = arith.constant 0 : index
      %54 = vector.load %arg12[%c0_42, %c0_43] : memref<2x128xf32, #tpu.memory_space<vmem>>, vector<2x128xf32>
      %c0_44 = arith.constant 0 : index
      %c0_45 = arith.constant 0 : index
      %55 = vector.load %arg8[%c0_44, %c0_45] : memref<1x128xf32, #tpu.memory_space<vmem>>, vector<1x128xf32>
      %56 = vector.broadcast %55 : vector<1x128xf32> to vector<2x128xf32>
      %57 = arith.mulf %54, %56 : vector<2x128xf32>
      %cst_46 = arith.constant dense<0.000000e+00> : vector<2xf32>
      %58 = vector.multi_reduction <add>, %57, %cst_46 [1] : vector<2x128xf32> to vector<2xf32>
      %59 = vector.shape_cast %58 : vector<2xf32> to vector<2x1xf32>
      %c0_47 = arith.constant 0 : index
      %c0_48 = arith.constant 0 : index
      %60 = vector.load %arg9[%c0_47, %c0_48] : memref<1x1xf32, #tpu.memory_space<vmem>>, vector<1x1xf32>
      %61 = vector.broadcast %60 : vector<1x1xf32> to vector<2x1xf32>
      %62 = arith.addf %59, %61 : vector<2x1xf32>
      %63 = arith.negf %62 : vector<2x1xf32>
      %64 = math.exp %63 : vector<2x1xf32>
      %cst_49 = arith.constant 1.000000e+00 : f32
      %65 = vector.broadcast %cst_49 : f32 to vector<2x1xf32>
      %66 = arith.addf %65, %64 : vector<2x1xf32>
      %67 = arith.divf %65, %66 : vector<2x1xf32>
      %c0_50 = arith.constant 0 : index
      %c0_51 = arith.constant 0 : index
      %68 = vector.load %arg10[%c0_50, %c0_51] : memref<2x1xf32, #tpu.memory_space<vmem>>, vector<2x1xf32>
      tpu.vector_store %arg10[%c0_50, %c0_51], %67 {strides = array<i32>} : memref<2x1xf32, #tpu.memory_space<vmem>>, vector<2x1xf32>,
    } else {
    }
    return
  }
  func.func @transform_0(%arg0: i32) -> (i32, i32, i32) {
    %c0_i32 = arith.constant 0 : i32
    %c0_i32_0 = arith.constant 0 : i32
    %c0_i32_1 = arith.constant 0 : i32
    %c0_i32_2 = arith.constant 0 : i32
    return %c0_i32, %c0_i32_0, %c0_i32_1 : i32, i32, i32
  }
  func.func @transform_1(%arg0: i32) -> (i32, i32) {
    %c0_i32 = arith.constant 0 : i32
    %c0_i32_0 = arith.constant 0 : i32
    %c0_i32_1 = arith.constant 0 : i32
    return %c0_i32, %c0_i32_0 : i32, i32
  }
  func.func @transform_2(%arg0: i32) -> (i32, i32) {
    %c0_i32 = arith.constant 0 : i32
    %c0_i32_0 = arith.constant 0 : i32
    %c0_i32_1 = arith.constant 0 : i32
    return %c0_i32, %c0_i32_0 : i32, i32
  }
  func.func @transform_3(%arg0: i32) -> (i32, i32) {
    %c0_i32 = arith.constant 0 : i32
    %c0_i32_0 = arith.constant 0 : i32
    %c0_i32_1 = arith.constant 0 : i32
    return %c0_i32, %c0_i32_0 : i32, i32
  }
  func.func @transform_4(%arg0: i32) -> (i32, i32) {
    %c0_i32 = arith.constant 0 : i32
    %c0_i32_0 = arith.constant 0 : i32
    %c0_i32_1 = arith.constant 0 : i32
    return %c0_i32, %c0_i32_0 : i32, i32
  }
  func.func @transform_5(%arg0: i32) -> (i32, i32, i32) {
    %c0_i32 = arith.constant 0 : i32
    %c0_i32_0 = arith.constant 0 : i32
    %c0_i32_1 = arith.constant 0 : i32
    return %arg0, %c0_i32, %c0_i32_0 : i32, i32, i32
  }
  func.func @transform_6(%arg0: i32) -> (i32, i32) {
    %c0_i32 = arith.constant 0 : i32
    %c0_i32_0 = arith.constant 0 : i32
    %c0_i32_1 = arith.constant 0 : i32
    return %c0_i32, %c0_i32_0 : i32, i32
  }
  func.func @transform_7(%arg0: i32) -> (i32, i32) {
    %c0_i32 = arith.constant 0 : i32
    %c0_i32_0 = arith.constant 0 : i32
    %c0_i32_1 = arith.constant 0 : i32
    return %c0_i32, %c0_i32_0 : i32, i32
  }
  func.func @transform_8(%arg0: i32) -> (i32, i32) {
    %c0_i32 = arith.constant 0 : i32
    %c0_i32_0 = arith.constant 0 : i32
    %c0_i32_1 = arith.constant 0 : i32
    return %c0_i32, %c0_i32_0 : i32, i32
  }
  func.func @transform_9(%arg0: i32) -> (i32, i32) {
    %c0_i32 = arith.constant 0 : i32
    %c0_i32_0 = arith.constant 0 : i32
    %c0_i32_1 = arith.constant 0 : i32
    return %c0_i32, %c0_i32_0 : i32, i32
  }
}

</mosaic_0001>

<bundles_post_ra>
// kernel: audio_forward.1
= control target key start
LH: loop header
LB: loop body
LE: loop exit
PB: predicated region body
PF: predicated region fallthrough
CT: control target
= control target key end

     0   :  { %s2491_s11 = smov 0   ;;  %s2836_s0 = inlined_call_operand.vmem [shape: f32[2,16,222], index: 0, kind: input, shape index: {}]   ;;  %s2837_s1 = inlined_call_operand.vmem [shape: f32[16,16], index: 1, kind: input, shape index: {}]   ;;  %s2838_s2 = inlined_call_operand.vmem [shape: f32[16,1], index: 2, kind: input, shape index: {}]   ;;  %s2839_s3 = inlined_call_operand.vmem [shape: bf16[16,144], index: 3, kind: input, shape index: {}]   ;;  %s2840_s4 = inlined_call_operand.vmem [shape: f32[16,1], index: 4, kind: input, shape index: {}]   ;;  %s2841_s5 = inlined_call_operand.vmem [shape: bf16[16,188,128], index: 5, kind: input, shape index: {}]   ;;  %s2842_s6 = inlined_call_operand.vmem [shape: f32[1,128], index: 6, kind: input, shape index: {}]   ;;  %s2843_s7 = inlined_call_operand.vmem [shape: f32[1,128], index: 7, kind: input, shape index: {}]   ;;  %s2844_s8 = inlined_call_operand.<no memory space> [shape: f32[1,1], index: 8, kind: input, shape index: {}]   ;;  %s2845_s9 = inlined_call_operand.vmem [shape: f32[2,1], index: 9, kind: output, shape index: {}]  }
   0x1   :  { %v14_v0 = vstv %s2844_s8 }
   0x2   :  { %15 = vst [vmem:[#allocation4] sm:$0x1] %v14_v0 }
   0x3 LB: > { %s2497_s12 = sadd.s32 4294967295, %s2424_s11   ;;  %p2010_p0 = scmp.ge.s32.totalorder %s2424_s11, 1  ;;  %s2424_s11 = sphi %s2491_s11, %s21_s11  }
   0x4   : > { %p286_p1 = scmp.lt.s32.totalorder %s2424_s11, 5 }
   0x6   : > { %p287_p2 = pnand %p2010_p0, %p286_p1 }
   0x7   : > { %s2011_s13 = sshll.u32 (!%p287_p2), %s2497_s12, 2  ;;  %p2013_p4 = scmp.ne.s32.totalorder (!%p287_p2), %s2497_s12, 0 }
   0x8   : > { %290 = sbr.rel (%p287_p2) target bundleno = 1122 (0x462), region = 56  ;;  %p319_p3 = scmp.lt.s32.totalorder (!%p287_p2), %s2011_s13, 15 }
   0xd   : > { %s2849_s13 = smov (!%p319_p3, %s2011_s13), 15  ;;  %329 = sbr.rel (%p2013_p4) target bundleno = 636 (0x27c), region = 60 }
   0xe   : > { %s2180_s8 = smul.u32 96, %s2849_s13  ;;  %s2428_s24 = smov (!%p2013_p4), 95  }
   0xf   : > { %s2429_s25 = smov (!%p2013_p4), 96   ;;  %s2430_s26 = smov (!%p2013_p4), 110  }
  0x10   : > { %s2505_s16 = scalar_lea.vmem %s2841_s5, %s2180_s8  ;;  %s2431_s27 = smov (!%p2013_p4), 111  }
  0x11   : > { %s2432_s28 = smov (!%p2013_p4), 112   ;;  %s2433_s29 = smov (!%p2013_p4), 126  }
  0x12   : > { %v2014_v1 = vld [vmem:[%s2842_s6] ss:$0 sm:$0xff]  ;;  %v343_v2 = vld [vmem:[%s2836_s0 + $0x18] sm:$0xff]  ;;  %v342_v4 = vld [vmem:[%s2836_s0 + $0x10] sm:$0xff]  ;;  %vm356_vm0 = vcmask 130048   ;;  %v2426_v11 = vmov 0.0  }
  0x13   : > { %v2023_v3 = vld [vmem:[%s2836_s0 + $0x38] sm:$0xff]  ;;  %337 = vst [vmem:[#allocation3] sm:$0x3] %v2014_v1  ;;  %391 = vmatprep.subr.mxu1 %v343_v2  ;;  %v2022_v5 = vld [vmem:[%s2836_s0 + $0x30] sm:$0xff]  ;;  %v341_v6 = vld [vmem:[%s2836_s0 + $0x8] sm:$0xff]  ;;  %427 = vmatprep.mubr.f32.mxu1 %v2426_v11  ;;  %v2427_v14 = vmov 0  }
  0x14   : > { %867 = vmatprep.subr.mxu0 %v2023_v3  ;;  %392 = vmatpush1.msra.mxu1 %v342_v4  ;;  %v2021_v7 = vld [vmem:[%s2836_s0 + $0x28] sm:$0xff]  ;;  %v340_v8 = vld [vmem:[%s2836_s0] sm:$0xff]  ;;  %s2434_s30 = smov 127   ;;  %s2435_s8 = smov 94   ;;  %vm546_vm1 = vcmask 777216   ;;  %vm531_vm2 = vcmask 785408  }
  0x15   : > { %868 = vmatpush1.msra.mxu0 %v2022_v5  ;;  %v2020_v9 = vld [vmem:[%s2836_s0 + $0x20] sm:$0xff]  ;;  %393 = vmatprep.subr.mxu1 %v341_v6  ;;  %v339_v13 = vld [vmem:[%s2837_s1 + $0x8] sm:$0xff]  ;;  %vm516_vm3 = vcmask 900096   ;;  %vm501_vm4 = vcmask 908288   ;;  %vm486_vm5 = vcmask 916480   ;;  %vm471_vm6 = vcmask 1031168  }
  0x16   : > { %869 = vmatprep.subr.mxu0 %v2021_v7  ;;  %v338_v10 = vld [vmem:[%s2837_s1] sm:$0xff]  ;;  %394 = vmatpush1.msra.mxu1 %v340_v8  ;;  %v345_v15 = vld [vmem:[%s2838_s2 + $0x8] sm:$0xff]  ;;  %vm456_vm7 = vcmask 1039360   ;;  %vm561_vm8 = vcmask 769024  }
  0x17   : > { %870 = vmatpush1.msra.mxu0 %v2020_v9  ;;  %903 = vmatprep.mubr.f32.mxu0 %v2426_v11  ;;  %v344_v12 = vld [vmem:[%s2838_s2] sm:$0xff]  ;;  %v589_v54 = vld [vmem:[%s2840_s4 + $0x8] sm:$0xff] }
  0x18   : > { %2015 = vmatmul.mubr.msk.f32.vlgmr.msra.gmra.mxu1 %vm356_vm0, %v338_v10  ;;  %2024 = vmatmul.mubr.msk.f32.vlgmr.msra.gmra.mxu0 %vm356_vm0, %v338_v10  ;;  %v2365_v52 = vld [vmem:[%s2839_s3 + $0x4] ss:$8 sps:$4 sm:$0xff]  }
  0x19   : > { %433 = vmatprep.mubr.f32.mxu1 %v2426_v11  ;;  %909 = vmatprep.mubr.f32.mxu0 %v2426_v11  ;;  %v588_v53 = vld [vmem:[%s2840_s4] sm:$0xff] }
  0x1a   : > { %2201 = vset.pattern.permute.xlu0 %v2427_v14  ;;  %2202 = vset.pattern.permute.xlu1 %v2427_v14 }
  0x1b   : > { %348 = vperm.xlu0 %2201, %v344_v12   ;;  %825 = vperm.xlu1 %2202, %v344_v12  }
  0x1c   : > { %2016 = vmatmul.mubr.msk.f32.gmra.mxu1 %vm356_vm0, %v339_v13  ;;  %2025 = vmatmul.mubr.msk.f32.gmra.mxu0 %vm356_vm0, %v339_v13 }
  0x1d   : > { %2019 = vmatprep.mubr.msk.bf16.mxu1 %vm356_vm0, %v2365_v52  ;;  %2028 = vmatprep.mubr.msk.bf16.mxu0 %vm356_vm0, %v2365_v52 }
  0x1f   : > { %353 = vperm.xlu0 %2201, %v345_v15   ;;  %830 = vperm.xlu1 %2202, %v345_v15  }
  0x96   : > { %v826_v16 = vpop.permute.xlu1 %825  ;;  %v349_v17 = vpop.permute.xlu0 %348 }
  0x9a   : > { %v831_v21 = vpop.permute.xlu1 %830  ;;  %v354_v25 = vpop.permute.xlu0 %353 }
  0xd8   : > { %v905_v18 = vpop.f32.mrf.mxu0  ;;  %v429_v19 = vpop.f32.mrf.mxu1 }
  0xd9   : > { %v906_v20 = vadd.f32 %v905_v18, %v826_v16  ;;  %v430_v22 = vadd.f32 %v429_v19, %v349_v17 }
  0xda   : > { %v907_v23 = vpop.f32.mrf.mxu0  ;;  %v431_v24 = vpop.f32.mrf.mxu1 }
  0xdb   : > { %v432_v26 = vadd.f32 %v431_v24, %v349_v17  ;;  %v908_v27 = vadd.f32 %v907_v23, %v826_v16  ;;  %v916_v30 = vmax.f32 %v906_v20, 0.0  ;;  %v440_v34 = vmax.f32 %v430_v22, 0.0 }
  0xdc   : > { %v911_v28 = vpop.f32.mrf.mxu0  ;;  %v435_v29 = vpop.f32.mrf.mxu1 }
  0xdd   : > { %v441_v31 = vmax.f32 %v432_v26, 0.0  ;;  %v912_v32 = vadd.f32 %v911_v28, %v831_v21  ;;  %v436_v33 = vadd.f32 %v435_v29, %v354_v25  ;;  %v917_v41 = vmax.f32 %v908_v27, 0.0 }
  0xde   : > { %v437_v35 = vpop.f32.mrf.mxu1  ;;  %v913_v36 = vpop.f32.mrf.mxu0 }
  0xdf   : > { %v918_v37 = vmax.f32 %v912_v32, 0.0  ;;  %v442_v38 = vmax.f32 %v436_v33, 0.0  ;;  %v438_v39 = vadd.f32 %v437_v35, %v354_v25  ;;  %v914_v40 = vadd.f32 %v913_v36, %v831_v21 }
  0xe0   : > { %v2203_v42 = vpack.i.bf16 %v441_v31, %v440_v34  ;;  %v2208_v50 = vpack.i.bf16 %v917_v41, %v916_v30 }
  0xe1   : > { %v443_v43 = vmax.f32 %v438_v39, 0.0  ;;  %v919_v44 = vmax.f32 %v914_v40, 0.0  ;;  %v2551_v45 = vpack.c.bf16 %v442_v38, %v440_v34  ;;  %v2553_v46 = vpack.c.bf16 %v918_v37, %v916_v30 }
  0xe2   : > { %2204 = vrot.lane.b32.xlu0 %v2203_v42, %s2428_s24 }
  0xe3   : > { %v2283_v47 = vpack.i.bf16 %v443_v43, %v442_v38  ;;  %v2555_v48 = vpack.c.bf16 %v443_v43, %v441_v31  ;;  %v2557_v49 = vpack.c.bf16 %v919_v44, %v917_v41  ;;  %v2288_v51 = vpack.i.bf16 %v919_v44, %v918_v37 }
  0xe5   : > { %2284 = vrot.lane.b32.xlu1 %v2283_v47, %s2428_s24 }
  0xe6   : > { %2209 = vrot.lane.b32.xlu0 %v2208_v50, %s2428_s24 }
  0xe9   : > { %2289 = vrot.lane.b32.xlu1 %v2288_v51, %s2428_s24 }
  0xea   : > { %2214 = vrot.lane.b32.xlu0 %v2203_v42, %s2429_s25 }
  0xed   : > { %2294 = vrot.lane.b32.xlu1 %v2283_v47, %s2429_s25 }
  0xee   : > { %2219 = vrot.lane.b32.xlu0 %v2208_v50, %s2429_s25 }
  0xf1   : > { %2299 = vrot.lane.b32.xlu1 %v2288_v51, %s2429_s25 }
  0xf2   : > { %2224 = vrot.lane.b32.xlu0 %v2203_v42, %s2430_s26 }
  0xf5   : > { %2304 = vrot.lane.b32.xlu1 %v2283_v47, %s2430_s26 }
  0xf6   : > { %2229 = vrot.lane.b32.xlu0 %v2208_v50, %s2430_s26 }
  0xf9   : > { %2309 = vrot.lane.b32.xlu1 %v2288_v51, %s2430_s26 }
  0xfa   : > { %2234 = vrot.lane.b32.xlu0 %v2203_v42, %s2431_s27 }
  0xfd   : > { %2314 = vrot.lane.b32.xlu1 %v2283_v47, %s2431_s27 }
  0xfe   : > { %2239 = vrot.lane.b32.xlu0 %v2208_v50, %s2431_s27 }
 0x101   : > { %2319 = vrot.lane.b32.xlu1 %v2288_v51, %s2431_s27 }
 0x102   : > { %2244 = vrot.lane.b32.xlu0 %v2203_v42, %s2432_s28 }
 0x105   : > { %2324 = vrot.lane.b32.xlu1 %v2283_v47, %s2432_s28 }
 0x106   : > { %2249 = vrot.lane.b32.xlu0 %v2208_v50, %s2432_s28 }
 0x109   : > { %2329 = vrot.lane.b32.xlu1 %v2288_v51, %s2432_s28 }
 0x10a   : > { %2254 = vrot.lane.b32.xlu0 %v2203_v42, %s2433_s29 }
 0x10d   : > { %2334 = vrot.lane.b32.xlu1 %v2283_v47, %s2433_s29 }
 0x10e   : > { %2259 = vrot.lane.b32.xlu0 %v2208_v50, %s2433_s29 }
 0x111   : > { %2339 = vrot.lane.b32.xlu1 %v2288_v51, %s2433_s29 }
 0x112   : > { %2264 = vrot.lane.b32.xlu0 %v2203_v42, %s2434_s30 }
 0x115   : > { %2344 = vrot.lane.b32.xlu1 %v2283_v47, %s2434_s30 }
 0x116   : > { %2269 = vrot.lane.b32.xlu0 %v2208_v50, %s2434_s30 }
 0x119   : > { %2349 = vrot.lane.b32.xlu1 %v2288_v51, %s2434_s30 }
 0x11a   : > { %2274 = vrot.lane.b32.xlu0 %v2203_v42, %s2435_s8 }
 0x11d   : > { %2354 = vrot.lane.b32.xlu1 %v2283_v47, %s2435_s8 }
 0x11e   : > { %2279 = vrot.lane.b32.xlu0 %v2208_v50, %s2435_s8 }
 0x121   : > { %2359 = vrot.lane.b32.xlu1 %v2288_v51, %s2435_s8 }
 0x122   : > { %592 = vperm.xlu0 %2201, %v588_v53  }
 0x125   : > { %597 = vperm.xlu1 %2202, %v589_v54  }
 0x126   : > { %1060 = vperm.xlu0 %2201, %v588_v53  }
 0x129   : > { %1065 = vperm.xlu1 %2202, %v589_v54  }
 0x154   : > { %v2205_v55 = vpop.permute.xlu0 %2204 }
 0x155   : > { %v2207_v56 = vunpack.i.h.bf16 %v2205_v55  ;;  %v2206_v57 = vunpack.i.l.bf16 %v2205_v55 }
 0x157   : > { %v2285_v58 = vpop.permute.xlu1 %2284  ;;  %v547_v62 = vsel %vm546_vm1, %v2206_v57, %v2207_v56 }
 0x158   : > { %v2287_v59 = vunpack.i.h.bf16 %v2285_v58  ;;  %v2286_v60 = vunpack.i.l.bf16 %v2285_v58  ;;  %v2210_v61 = vpop.permute.xlu0 %2209 }
 0x159   : > { %v2212_v1 = vunpack.i.h.bf16 %v2210_v61  ;;  %v2211_v2 = vunpack.i.l.bf16 %v2210_v61 }
 0x15a   : > { %v548_v63 = vsel %vm546_vm1, %v2286_v60, %v2287_v59  ;;  %v585_v0 = vpack.c.bf16 %v2287_v59, %v2207_v56 }
 0x15b   : > { %v584_v3 = vpack.c.bf16 %v548_v63, %v547_v62  ;;  %v2290_v4 = vpop.permute.xlu1 %2289  ;;  %v1016_v10 = vsel %vm546_vm1, %v2211_v2, %v2212_v1 }
 0x15c   : > { %v2292_v5 = vunpack.i.h.bf16 %v2290_v4  ;;  %v2291_v6 = vunpack.i.l.bf16 %v2290_v4  ;;  %v2215_v7 = vpop.permute.xlu0 %2214  ;;  %612 = vmatprep.subr.bf16.mxu1 %v585_v0 }
 0x15d   : > { %v2217_v8 = vunpack.i.h.bf16 %v2215_v7  ;;  %v2216_v9 = vunpack.i.l.bf16 %v2215_v7  ;;  %613 = vmatpush1.bf16.msra.mxu1 %v584_v3 }
 0x15e   : > { %v1017_v11 = vsel %vm546_vm1, %v2291_v6, %v2292_v5  ;;  %v1053_v12 = vpack.c.bf16 %v2292_v5, %v2212_v1 }
 0x15f   : > { %v1052_v13 = vpack.c.bf16 %v1017_v11, %v1016_v10  ;;  %v2295_v14 = vpop.permute.xlu1 %2294  ;;  %v532_v18 = vsel %vm531_vm2, %v2216_v9, %v2217_v8 }
 0x160   : > { %v2297_v15 = vunpack.i.h.bf16 %v2295_v14  ;;  %v2296_v16 = vunpack.i.l.bf16 %v2295_v14  ;;  %v2220_v17 = vpop.permute.xlu0 %2219  ;;  %1080 = vmatprep.subr.bf16.mxu0 %v1053_v12 }
 0x161   : > { %1081 = vmatpush1.bf16.msra.mxu0 %v1052_v13  ;;  %v2222_v21 = vunpack.i.h.bf16 %v2220_v17  ;;  %v2221_v22 = vunpack.i.l.bf16 %v2220_v17 }
 0x162   : > { %v533_v19 = vsel %vm531_vm2, %v2296_v16, %v2297_v15  ;;  %v583_v20 = vpack.c.bf16 %v2297_v15, %v2217_v8 }
 0x163   : > { %v582_v23 = vpack.c.bf16 %v533_v19, %v532_v18  ;;  %v2300_v24 = vpop.permute.xlu1 %2299  ;;  %v1002_v30 = vsel %vm531_vm2, %v2221_v22, %v2222_v21 }
 0x164   : > { %v2302_v25 = vunpack.i.h.bf16 %v2300_v24  ;;  %v2301_v26 = vunpack.i.l.bf16 %v2300_v24  ;;  %v2225_v27 = vpop.permute.xlu0 %2224  ;;  %614 = vmatprep.subr.bf16.mxu1 %v583_v20 }
 0x165   : > { %v2227_v28 = vunpack.i.h.bf16 %v2225_v27  ;;  %v2226_v29 = vunpack.i.l.bf16 %v2225_v27  ;;  %615 = vmatpush1.bf16.msra.mxu1 %v582_v23 }
 0x166   : > { %v1003_v31 = vsel %vm531_vm2, %v2301_v26, %v2302_v25  ;;  %v1051_v32 = vpack.c.bf16 %v2302_v25, %v2222_v21 }
 0x167   : > { %v1050_v33 = vpack.c.bf16 %v1003_v31, %v1002_v30  ;;  %v2305_v34 = vpop.permute.xlu1 %2304  ;;  %v517_v38 = vsel %vm516_vm3, %v2226_v29, %v2227_v28 }
 0x168   : > { %v2307_v35 = vunpack.i.h.bf16 %v2305_v34  ;;  %v2306_v36 = vunpack.i.l.bf16 %v2305_v34  ;;  %v2230_v37 = vpop.permute.xlu0 %2229  ;;  %1082 = vmatprep.subr.bf16.mxu0 %v1051_v32 }
 0x169   : > { %1083 = vmatpush1.bf16.msra.mxu0 %v1050_v33  ;;  %v2232_v41 = vunpack.i.h.bf16 %v2230_v37  ;;  %v2231_v42 = vunpack.i.l.bf16 %v2230_v37 }
 0x16a   : > { %v518_v39 = vsel %vm516_vm3, %v2306_v36, %v2307_v35  ;;  %v581_v40 = vpack.c.bf16 %v2307_v35, %v2227_v28 }
 0x16b   : > { %v580_v43 = vpack.c.bf16 %v518_v39, %v517_v38  ;;  %v2310_v44 = vpop.permute.xlu1 %2309  ;;  %v988_v54 = vsel %vm516_vm3, %v2231_v42, %v2232_v41 }
 0x16c   : > { %v2312_v47 = vunpack.i.h.bf16 %v2310_v44  ;;  %v2311_v50 = vunpack.i.l.bf16 %v2310_v44  ;;  %v2235_v51 = vpop.permute.xlu0 %2234  ;;  %616 = vmatprep.subr.bf16.mxu1 %v581_v40 }
 0x16d   : > { %v2237_v52 = vunpack.i.h.bf16 %v2235_v51  ;;  %v2236_v53 = vunpack.i.l.bf16 %v2235_v51  ;;  %617 = vmatpush1.bf16.msra.mxu1 %v580_v43 }
 0x16e   : > { %v989_v55 = vsel %vm516_vm3, %v2311_v50, %v2312_v47  ;;  %v1049_v56 = vpack.c.bf16 %v2312_v47, %v2232_v41 }
 0x16f   : > { %v1048_v57 = vpack.c.bf16 %v989_v55, %v988_v54  ;;  %v2315_v58 = vpop.permute.xlu1 %2314  ;;  %v502_v62 = vsel %vm501_vm4, %v2236_v53, %v2237_v52 }
 0x170   : > { %v2317_v59 = vunpack.i.h.bf16 %v2315_v58  ;;  %v2316_v60 = vunpack.i.l.bf16 %v2315_v58  ;;  %v2240_v61 = vpop.permute.xlu0 %2239  ;;  %1084 = vmatprep.subr.bf16.mxu0 %v1049_v56 }
 0x171   : > { %1085 = vmatpush1.bf16.msra.mxu0 %v1048_v57  ;;  %v2242_v1 = vunpack.i.h.bf16 %v2240_v61  ;;  %v2241_v2 = vunpack.i.l.bf16 %v2240_v61 }
 0x172   : > { %v503_v63 = vsel %vm501_vm4, %v2316_v60, %v2317_v59  ;;  %v579_v0 = vpack.c.bf16 %v2317_v59, %v2237_v52 }
 0x173   : > { %v578_v3 = vpack.c.bf16 %v503_v63, %v502_v62  ;;  %v2320_v4 = vpop.permute.xlu1 %2319  ;;  %v974_v10 = vsel %vm501_vm4, %v2241_v2, %v2242_v1 }
 0x174   : > { %v2322_v5 = vunpack.i.h.bf16 %v2320_v4  ;;  %v2321_v6 = vunpack.i.l.bf16 %v2320_v4  ;;  %v2245_v7 = vpop.permute.xlu0 %2244  ;;  %618 = vmatprep.subr.bf16.mxu1 %v579_v0 }
 0x175   : > { %v2247_v8 = vunpack.i.h.bf16 %v2245_v7  ;;  %v2246_v9 = vunpack.i.l.bf16 %v2245_v7  ;;  %619 = vmatpush1.bf16.msra.mxu1 %v578_v3 }
 0x176   : > { %v975_v11 = vsel %vm501_vm4, %v2321_v6, %v2322_v5  ;;  %v1047_v12 = vpack.c.bf16 %v2322_v5, %v2242_v1 }
 0x177   : > { %v1046_v13 = vpack.c.bf16 %v975_v11, %v974_v10  ;;  %v2325_v14 = vpop.permute.xlu1 %2324  ;;  %v487_v18 = vsel %vm486_vm5, %v2246_v9, %v2247_v8 }
 0x178   : > { %v2327_v15 = vunpack.i.h.bf16 %v2325_v14  ;;  %v2326_v16 = vunpack.i.l.bf16 %v2325_v14  ;;  %v2250_v17 = vpop.permute.xlu0 %2249  ;;  %1086 = vmatprep.subr.bf16.mxu0 %v1047_v12 }
 0x179   : > { %1087 = vmatpush1.bf16.msra.mxu0 %v1046_v13  ;;  %v2252_v21 = vunpack.i.h.bf16 %v2250_v17  ;;  %v2251_v22 = vunpack.i.l.bf16 %v2250_v17 }
 0x17a   : > { %v488_v19 = vsel %vm486_vm5, %v2326_v16, %v2327_v15  ;;  %v577_v20 = vpack.c.bf16 %v2327_v15, %v2247_v8 }
 0x17b   : > { %v576_v23 = vpack.c.bf16 %v488_v19, %v487_v18  ;;  %v2330_v24 = vpop.permute.xlu1 %2329  ;;  %v960_v30 = vsel %vm486_vm5, %v2251_v22, %v2252_v21 }
 0x17c   : > { %v2332_v25 = vunpack.i.h.bf16 %v2330_v24  ;;  %v2331_v26 = vunpack.i.l.bf16 %v2330_v24  ;;  %v2255_v27 = vpop.permute.xlu0 %2254  ;;  %620 = vmatprep.subr.bf16.mxu1 %v577_v20 }
 0x17d   : > { %v2257_v28 = vunpack.i.h.bf16 %v2255_v27  ;;  %v2256_v29 = vunpack.i.l.bf16 %v2255_v27  ;;  %621 = vmatpush1.bf16.msra.mxu1 %v576_v23 }
 0x17e   : > { %v961_v31 = vsel %vm486_vm5, %v2331_v26, %v2332_v25  ;;  %v1045_v32 = vpack.c.bf16 %v2332_v25, %v2252_v21  ;;  %v2363_v26 = vld [vmem:[%s2839_s3] ss:$8 sps:$4 sm:$0xff]  }
 0x17f   : > { %v1044_v33 = vpack.c.bf16 %v961_v31, %v960_v30  ;;  %v2335_v34 = vpop.permute.xlu1 %2334  ;;  %v472_v38 = vsel %vm471_vm6, %v2256_v29, %v2257_v28  ;;  %v668_v31 = vlaneseq }
 0x180   : > { %v2337_v35 = vunpack.i.h.bf16 %v2335_v34  ;;  %v2336_v36 = vunpack.i.l.bf16 %v2335_v34  ;;  %v2260_v37 = vpop.permute.xlu0 %2259  ;;  %1088 = vmatprep.subr.bf16.mxu0 %v1045_v32 }
 0x181   : > { %1089 = vmatpush1.bf16.msra.mxu0 %v1044_v33  ;;  %v2262_v41 = vunpack.i.h.bf16 %v2260_v37  ;;  %v2261_v42 = vunpack.i.l.bf16 %v2260_v37  ;;  %vm2613_vm9 = vcmp.lt.s32.totalorder %v668_v31, 188 }
 0x182   : > { %v473_v39 = vsel %vm471_vm6, %v2336_v36, %v2337_v35  ;;  %v575_v40 = vpack.c.bf16 %v2337_v35, %v2257_v28  ;;  %v669_v36 = vshrl.u32 %v668_v31, 7 }
 0x183   : > { %v574_v43 = vpack.c.bf16 %v473_v39, %v472_v38  ;;  %v2340_v44 = vpop.permute.xlu1 %2339  ;;  %v946_v54 = vsel %vm471_vm6, %v2261_v42, %v2262_v41 }
 0x184   : > { %v2342_v47 = vunpack.i.h.bf16 %v2340_v44  ;;  %v2341_v50 = vunpack.i.l.bf16 %v2340_v44  ;;  %v2265_v51 = vpop.permute.xlu0 %2264  ;;  %622 = vmatprep.subr.bf16.mxu1 %v575_v40 }
 0x185   : > { %v2267_v52 = vunpack.i.h.bf16 %v2265_v51  ;;  %v2266_v53 = vunpack.i.l.bf16 %v2265_v51  ;;  %623 = vmatpush1.bf16.msra.mxu1 %v574_v43 }
 0x186   : > { %v947_v55 = vsel %vm471_vm6, %v2341_v50, %v2342_v47  ;;  %v1043_v56 = vpack.c.bf16 %v2342_v47, %v2262_v41 }
 0x187   : > { %v1042_v57 = vpack.c.bf16 %v947_v55, %v946_v54  ;;  %v2345_v58 = vpop.permute.xlu1 %2344  ;;  %v457_v62 = vsel %vm456_vm7, %v2266_v53, %v2267_v52 }
 0x188   : > { %v2347_v59 = vunpack.i.h.bf16 %v2345_v58  ;;  %v2346_v60 = vunpack.i.l.bf16 %v2345_v58  ;;  %v2270_v61 = vpop.permute.xlu0 %2269  ;;  %1090 = vmatprep.subr.bf16.mxu0 %v1043_v56 }
 0x189   : > { %1091 = vmatpush1.bf16.msra.mxu0 %v1042_v57  ;;  %v2272_v1 = vunpack.i.h.bf16 %v2270_v61  ;;  %v2271_v2 = vunpack.i.l.bf16 %v2270_v61 }
 0x18a   : > { %v458_v63 = vsel %vm456_vm7, %v2346_v60, %v2347_v59  ;;  %v573_v0 = vpack.c.bf16 %v2347_v59, %v2267_v52 }
 0x18b   : > { %v572_v3 = vpack.c.bf16 %v458_v63, %v457_v62  ;;  %v2350_v4 = vpop.permute.xlu1 %2349  ;;  %v932_v10 = vsel %vm456_vm7, %v2271_v2, %v2272_v1 }
 0x18c   : > { %v2352_v5 = vunpack.i.h.bf16 %v2350_v4  ;;  %v2351_v6 = vunpack.i.l.bf16 %v2350_v4  ;;  %v2275_v7 = vpop.permute.xlu0 %2274  ;;  %624 = vmatprep.subr.bf16.mxu1 %v573_v0 }
 0x18d   : > { %v2277_v8 = vunpack.i.h.bf16 %v2275_v7  ;;  %v2276_v9 = vunpack.i.l.bf16 %v2275_v7  ;;  %625 = vmatpush1.bf16.msra.mxu1 %v572_v3 }
 0x18e   : > { %v933_v11 = vsel %vm456_vm7, %v2351_v6, %v2352_v5  ;;  %v1041_v12 = vpack.c.bf16 %v2352_v5, %v2272_v1  ;;  %626 = vmatprep.subr.bf16.mxu1 %v2555_v48 }
 0x18f   : > { %v1040_v13 = vpack.c.bf16 %v933_v11, %v932_v10  ;;  %v2355_v14 = vpop.permute.xlu1 %2354  ;;  %v562_v18 = vsel %vm561_vm8, %v2276_v9, %v2277_v8 }
 0x190   : > { %v2357_v15 = vunpack.i.h.bf16 %v2355_v14  ;;  %v2356_v16 = vunpack.i.l.bf16 %v2355_v14  ;;  %v2280_v17 = vpop.permute.xlu0 %2279  ;;  %1092 = vmatprep.subr.bf16.mxu0 %v1041_v12 }
 0x191   : > { %627 = vmatpush1.bf16.msra.mxu1 %v2551_v45  ;;  %1093 = vmatpush1.bf16.msra.mxu0 %v1040_v13  ;;  %v2282_v21 = vunpack.i.h.bf16 %v2280_v17  ;;  %v2281_v22 = vunpack.i.l.bf16 %v2280_v17 }
 0x192   : > { %v563_v19 = vsel %vm561_vm8, %v2356_v16, %v2357_v15  ;;  %v587_v20 = vpack.c.bf16 %v2357_v15, %v2277_v8  ;;  %1094 = vmatprep.subr.bf16.mxu0 %v2557_v49  ;;  %v2436_v49 = vmov 1966171168  }
 0x193   : > { %v586_v23 = vpack.c.bf16 %v563_v19, %v562_v18  ;;  %v2360_v48 = vpop.permute.xlu1 %2359  ;;  %v1030_v45 = vsel %vm561_vm8, %v2281_v22, %v2282_v21  ;;  %v666_v30 = vunpack.c.l.s4 %v2436_v49 }
 0x194   : > { %v2362_v24 = vunpack.i.h.bf16 %v2360_v48  ;;  %v2361_v25 = vunpack.i.l.bf16 %v2360_v48  ;;  %642 = vmatprep.subr.bf16.mxu1 %v587_v20 }
 0x195   : > { %643 = vmatpush2.bf16.msra.mxu1 %v586_v23  ;;  %1095 = vmatpush1.bf16.msra.mxu0 %v2553_v46  ;;  %v667_v35 = vunpack.c.0.s8 %v666_v30 }
 0x196   : > { %v1031_v27 = vsel %vm561_vm8, %v2361_v25, %v2362_v24  ;;  %v1055_v28 = vpack.c.bf16 %v2362_v24, %v2282_v21 }
 0x197   : > { %v1054_v29 = vpack.c.bf16 %v1031_v27, %v1030_v45  ;;  %v2609_v44 = vsub.s32 %v667_v35, %v669_v36 }
 0x198   : > { %645 = vmatmul.mubr.bf16.vlgmr.msra.gmra.mxu1 %v2363_v26  ;;  %1110 = vmatprep.subr.bf16.mxu0 %v1055_v28 }
 0x199   : > { %1111 = vmatpush2.bf16.msra.mxu0 %v1054_v29 }
 0x19c   : > { %1113 = vmatmul.mubr.bf16.vlgmr.msra.gmra.mxu0 %v2363_v26 }
 0x19d   : > { %v593_v32 = vpop.permute.xlu0 %592 }
 0x1a0   : > { %v598_v40 = vpop.permute.xlu1 %597 }
 0x1a1   : > { %v1061_v41 = vpop.permute.xlu0 %1060 }
 0x1a4   : > { %v1066_v14 = vpop.permute.xlu1 %1065 }
 0x258   : > { %v646_v33 = vpop.f32.mrf.mxu1 }
 0x259   : > { %v647_v34 = vadd.f32 %v646_v33, %v593_v32 }
 0x25a   : > { %v648_v37 = vpop.f32.mrf.mxu1 }
 0x25b   : > { %v649_v46 = vadd.f32 %v648_v37, %v593_v32  ;;  %v655_v42 = vmax.f32 %v647_v34, 0.0 }
 0x25c   : > { %v650_v38 = vpop.f32.mrf.mxu1  ;;  %v1114_v39 = vpop.f32.mrf.mxu0 }
 0x25d   : > { %v656_v43 = vmax.f32 %v649_v46, 0.0  ;;  %v651_v47 = vadd.f32 %v650_v38, %v598_v40  ;;  %v1115_v50 = vadd.f32 %v1114_v39, %v1061_v41 }
 0x25e   : > { %v652_v51 = vpop.f32.mrf.mxu1  ;;  %v1116_v52 = vpop.f32.mrf.mxu0 }
 0x25f   : > { %v663_v53 = vcombine.low %v655_v42, %v656_v43  ;;  %v664_v54 = vcombine.high %v655_v42, %v656_v43  ;;  %v653_v55 = vadd.f32 %v652_v51, %v598_v40  ;;  %v1117_v56 = vadd.f32 %v1116_v52, %v1061_v41 }
 0x260   : > { %v1118_v57 = vpop.f32.mrf.mxu0  ;;  %v657_v61 = vmax.f32 %v651_v47, 0.0  ;;  %v1123_v62 = vmax.f32 %v1115_v50, 0.0 }
 0x261   : > { %v671_v58 = vrot.slane %v663_v53, %v2609_v44  ;;  %v678_v59 = vrot.slane %v664_v54, %v2609_v44  ;;  %v658_v63 = vmax.f32 %v653_v55, 0.0  ;;  %v1124_v0 = vmax.f32 %v1117_v56, 0.0 }
 0x262   : > { %v1120_v9 = vpop.f32.mrf.mxu0  ;;  %v1119_v21 = vadd.f32 %v1118_v57, %v1066_v14 }
 0x263   : > { %v679_v1 = vcombine.high %v671_v58, %v671_v58  ;;  %v680_v2 = vcombine.high %v678_v59, %v678_v59  ;;  %v687_v3 = vrot.slane %v671_v58, %v2609_v44  ;;  %v694_v4 = vrot.slane %v678_v59, %v2609_v44 }
 0x264   : > { %v713_v5 = vcombine.low %v657_v61, %v658_v63  ;;  %v714_v6 = vcombine.high %v657_v61, %v658_v63  ;;  %v1131_v7 = vcombine.low %v1123_v62, %v1124_v0  ;;  %v1132_v8 = vcombine.high %v1123_v62, %v1124_v0 }
 0x265   : > { %v701_v10 = vrot.slane %v679_v1, %v2609_v44  ;;  %v708_v11 = vrot.slane %v680_v2, %v2609_v44  ;;  %v709_v12 = vcombine.high %v687_v3, %v687_v3  ;;  %v710_v13 = vcombine.high %v694_v4, %v694_v4  ;;  %783 = vst.msk [vmem:[#allocation2] ss:$2 sm:$0x3] %vm2613_vm9, %v687_v3 }
 0x266   : > { %791 = vst.msk [vmem:[#allocation2 + $0x10] ss:$2 sm:$0x3] %vm2613_vm9, %v694_v4  ;;  %v721_v15 = vrot.slane %v713_v5, %v2609_v44  ;;  %v728_v16 = vrot.slane %v714_v6, %v2609_v44  ;;  %v1139_v17 = vrot.slane %v1131_v7, %v2609_v44  ;;  %v1146_v18 = vrot.slane %v1132_v8, %v2609_v44 }
 0x267   : > { %v711_v19 = vcombine.high %v701_v10, %v701_v10  ;;  %v712_v20 = vcombine.high %v708_v11, %v708_v11  ;;  %785 = vst.msk [vmem:[#allocation2 + $0x4] ss:$2 sm:$0x3] %vm2613_vm9, %v701_v10  ;;  %787 = vst.msk [vmem:[#allocation2 + $0x8] ss:$2 sm:$0x3] %vm2613_vm9, %v709_v12  ;;  %v1121_v22 = vadd.f32 %v1120_v9, %v1066_v14 }
 0x268   : > { %793 = vst.msk [vmem:[#allocation2 + $0x14] ss:$2 sm:$0x3] %vm2613_vm9, %v708_v11  ;;  %795 = vst.msk [vmem:[#allocation2 + $0x18] ss:$2 sm:$0x3] %vm2613_vm9, %v710_v13  ;;  %v729_v23 = vcombine.high %v721_v15, %v721_v15  ;;  %v730_v48 = vcombine.high %v728_v16, %v728_v16  ;;  %v737_v24 = vrot.slane %v721_v15, %v2609_v44 }
 0x269   : > { %v744_v25 = vrot.slane %v728_v16, %v2609_v44  ;;  %789 = vst.msk [vmem:[#allocation2 + $0xc] ss:$2 sm:$0x3] %vm2613_vm9, %v711_v19  ;;  %797 = vst.msk [vmem:[#allocation2 + $0x1c] ss:$2 sm:$0x3] %vm2613_vm9, %v712_v20  ;;  %v1147_v26 = vcombine.high %v1139_v17, %v1139_v17  ;;  %v1148_v45 = vcombine.high %v1146_v18, %v1146_v18 }
 0x26a   : > { %v1155_v27 = vrot.slane %v1139_v17, %v2609_v44  ;;  %v1162_v28 = vrot.slane %v1146_v18, %v2609_v44  ;;  %v751_v29 = vrot.slane %v729_v23, %v2609_v44  ;;  %v758_v49 = vrot.slane %v730_v48, %v2609_v44  ;;  %799 = vst.msk [vmem:[#allocation2 + $0x20] ss:$2 sm:$0x3] %vm2613_vm9, %v737_v24 }
 0x26b   : > { %v759_v30 = vcombine.high %v737_v24, %v737_v24  ;;  %v760_v31 = vcombine.high %v744_v25, %v744_v25  ;;  %807 = vst.msk [vmem:[#allocation2 + $0x30] ss:$2 sm:$0x3] %vm2613_vm9, %v744_v25  ;;  %v1169_v32 = vrot.slane %v1147_v26, %v2609_v44  ;;  %v1176_v33 = vrot.slane %v1148_v45, %v2609_v44 }
 0x26c   : > { %v1177_v34 = vcombine.high %v1155_v27, %v1155_v27  ;;  %v1178_v35 = vcombine.high %v1162_v28, %v1162_v28  ;;  %1248 = vst.msk [vmem:[#allocation2 + $0x1] ss:$2 sm:$0x3] %vm2613_vm9, %v1155_v27  ;;  %1256 = vst.msk [vmem:[#allocation2 + $0x11] ss:$2 sm:$0x3] %vm2613_vm9, %v1162_v28  ;;  %v761_v36 = vcombine.high %v751_v29, %v751_v29 }
 0x26d   : > { %v762_v37 = vcombine.high %v758_v49, %v758_v49  ;;  %801 = vst.msk [vmem:[#allocation2 + $0x24] ss:$2 sm:$0x3] %vm2613_vm9, %v751_v29  ;;  %803 = vst.msk [vmem:[#allocation2 + $0x28] ss:$2 sm:$0x3] %vm2613_vm9, %v759_v30  ;;  %v1179_v39 = vcombine.high %v1169_v32, %v1169_v32  ;;  %v1180_v40 = vcombine.high %v1176_v33, %v1176_v33 }
 0x26e   : > { %809 = vst.msk [vmem:[#allocation2 + $0x34] ss:$2 sm:$0x3] %vm2613_vm9, %v758_v49  ;;  %811 = vst.msk [vmem:[#allocation2 + $0x38] ss:$2 sm:$0x3] %vm2613_vm9, %v760_v31 }
 0x26f   : > { %v1125_v46 = vmax.f32 %v1119_v21, 0.0  ;;  %v1126_v38 = vmax.f32 %v1121_v22, 0.0  ;;  %1250 = vst.msk [vmem:[#allocation2 + $0x5] ss:$2 sm:$0x3] %vm2613_vm9, %v1169_v32 }
 0x270   : > { %1252 = vst.msk [vmem:[#allocation2 + $0x9] ss:$2 sm:$0x3] %vm2613_vm9, %v1177_v34  ;;  %1258 = vst.msk [vmem:[#allocation2 + $0x15] ss:$2 sm:$0x3] %vm2613_vm9, %v1176_v33 }
 0x271   : > { %1260 = vst.msk [vmem:[#allocation2 + $0x19] ss:$2 sm:$0x3] %vm2613_vm9, %v1178_v35  ;;  %805 = vst.msk [vmem:[#allocation2 + $0x2c] ss:$2 sm:$0x3] %vm2613_vm9, %v761_v36  ;;  %v1181_v41 = vcombine.low %v1125_v46, %v1126_v38  ;;  %v1182_v42 = vcombine.high %v1125_v46, %v1126_v38 }
 0x272   : > { %813 = vst.msk [vmem:[#allocation2 + $0x3c] ss:$2 sm:$0x3] %vm2613_vm9, %v762_v37  ;;  %1254 = vst.msk [vmem:[#allocation2 + $0xd] ss:$2 sm:$0x3] %vm2613_vm9, %v1179_v39 }
 0x273   : > { %1262 = vst.msk [vmem:[#allocation2 + $0x1d] ss:$2 sm:$0x3] %vm2613_vm9, %v1180_v40  ;;  %v1189_v43 = vrot.slane %v1181_v41, %v2609_v44  ;;  %v1196_v47 = vrot.slane %v1182_v42, %v2609_v44 }
 0x275   : > { %v1197_v50 = vcombine.high %v1189_v43, %v1189_v43  ;;  %v1198_v51 = vcombine.high %v1196_v47, %v1196_v47  ;;  %v1205_v52 = vrot.slane %v1189_v43, %v2609_v44  ;;  %v1212_v53 = vrot.slane %v1196_v47, %v2609_v44 }
 0x277   : > { %v1219_v54 = vrot.slane %v1197_v50, %v2609_v44  ;;  %v1226_v55 = vrot.slane %v1198_v51, %v2609_v44  ;;  %v1227_v56 = vcombine.high %v1205_v52, %v1205_v52  ;;  %v1228_v57 = vcombine.high %v1212_v53, %v1212_v53  ;;  %1264 = vst.msk [vmem:[#allocation2 + $0x21] ss:$2 sm:$0x3] %vm2613_vm9, %v1205_v52 }
 0x278   : > { %1272 = vst.msk [vmem:[#allocation2 + $0x31] ss:$2 sm:$0x3] %vm2613_vm9, %v1212_v53 }
 0x279   : > { %v1229_v58 = vcombine.high %v1219_v54, %v1219_v54  ;;  %v1230_v59 = vcombine.high %v1226_v55, %v1226_v55  ;;  %1266 = vst.msk [vmem:[#allocation2 + $0x25] ss:$2 sm:$0x3] %vm2613_vm9, %v1219_v54  ;;  %1268 = vst.msk [vmem:[#allocation2 + $0x29] ss:$2 sm:$0x3] %vm2613_vm9, %v1227_v56 }
 0x27a   : > { %1274 = vst.msk [vmem:[#allocation2 + $0x35] ss:$2 sm:$0x3] %vm2613_vm9, %v1226_v55  ;;  %1276 = vst.msk [vmem:[#allocation2 + $0x39] ss:$2 sm:$0x3] %vm2613_vm9, %v1228_v57 }
 0x27b   : > { %1270 = vst.msk [vmem:[#allocation2 + $0x2d] ss:$2 sm:$0x3] %vm2613_vm9, %v1229_v58  ;;  %1278 = vst.msk [vmem:[#allocation2 + $0x3d] ss:$2 sm:$0x3] %vm2613_vm9, %v1230_v59 }
 0x27c PF: > { %v2366_v44 = vld [vmem:[%s2505_s16 + $0x38] sm:$0xff]   ;;  %v2437_v61 = vmov 0   ;;  %v2368_v63 = vld [vmem:[%s2505_s16 + $0x30] sm:$0xff]   ;;  %v2370_v0 = vld [vmem:[%s2505_s16 + $0x28] sm:$0xff]   ;;  %s2176_s21 = sshll.u32 %s2497_s12, 4  ;;  %vm1397_vm10 = vcmask 1045504  }
 0x27d   : > { %1401 = vmatprep.subr.bf16.mxu0 %v2437_v61  ;;  %1564 = vmatprep.subr.bf16.mxu1 %v2437_v61  ;;  %v2367_v62 = vld [vmem:[%s2505_s16 + $0x98] sm:$0xff]   ;;  %v2369_v60 = vld [vmem:[%s2505_s16 + $0x90] sm:$0xff]   ;;  %v2371_v1 = vld [vmem:[%s2505_s16 + $0x88] sm:$0xff]   ;;  %s2733_s22 = scalar_lea.vmem [#allocation2], %s2176_s21  ;;  %vm1393_vm11 = vcmask 490496   ;;  %p2169_p5 = scmp.ne.s32.totalorder %s2497_s12, 3 }
 0x27e   : > { %1402 = vmatpush1.bf16.msra.mxu0 %v2366_v44  ;;  %1565 = vmatpush1.bf16.msra.mxu1 %v2367_v62  ;;  %v2372_v2 = vld [vmem:[%s2505_s16 + $0x20] sm:$0xff]   ;;  %v2374_v4 = vld [vmem:[%s2505_s16 + $0x18] sm:$0xff]   ;;  %v2376_v6 = vld [vmem:[%s2505_s16 + $0x10] sm:$0xff]  }
 0x27f   : > { %1403 = vmatprep.subr.bf16.mxu0 %v2437_v61  ;;  %1566 = vmatprep.subr.bf16.mxu1 %v2437_v61  ;;  %v2373_v3 = vld [vmem:[%s2505_s16 + $0x80] sm:$0xff]   ;;  %v2375_v5 = vld [vmem:[%s2505_s16 + $0x78] sm:$0xff]   ;;  %v2377_v7 = vld [vmem:[%s2505_s16 + $0x70] sm:$0xff]  }
 0x280   : > { %v2378_v8 = vld [vmem:[%s2505_s16 + $0x8] sm:$0xff]   ;;  %v2380_v10 = vld [vmem:[%s2505_s16] sm:$0xff]   ;;  %v2382_v16 = vld [vmem:[%s2505_s16 + $0x58] sm:$0x3f]  }
 0x281   : > { %v2379_v9 = vld [vmem:[%s2505_s16 + $0x68] sm:$0xff]   ;;  %v2381_v14 = vld [vmem:[%s2505_s16 + $0x60] sm:$0xff]   ;;  %v2383_v18 = vld [vmem:[%s2505_s16 + $0xb8] sm:$0x3f]   ;;  %v1399_v20 = vsel %vm1397_vm10, %v2382_v16, 0 }
 0x282   : > { %1404 = vmatpush1.bf16.msra.mxu0 %v2368_v63  ;;  %1567 = vmatpush1.bf16.msra.mxu1 %v2369_v60  ;;  %v2032_v11 = vld.sshfl [vmem:[%s2733_s22] sm:$0x33 pattern:$0x76325410]  ;;  %v1562_v21 = vsel %vm1397_vm10, %v2383_v18, 0  ;;  %v2384_v22 = vld [vmem:[%s2505_s16 + $0x50] sm:$0xff]  }
 0x283   : > { %1405 = vmatprep.subr.bf16.mxu0 %v2437_v61  ;;  %1568 = vmatprep.subr.bf16.mxu1 %v2437_v61  ;;  %v1293_v12 = vcombine.high %v2032_v11, %v2032_v11  ;;  %v2049_v13 = vld.sshfl [vmem:[%s2733_s22 + $0x4] sm:$0x33 pattern:$0x76325410]  ;;  %v2385_v23 = vld [vmem:[%s2505_s16 + $0xb0] sm:$0xff]   ;;  %v2386_v48 = vld [vmem:[%s2505_s16 + $0x48] sm:$0xff]   ;;  %v1296_v45 = vpack.c.bf16 %v2032_v11, %v2032_v11 }
 0x284   : > { %v1457_v15 = vcombine.high %v2049_v13, %v2049_v13  ;;  %v2387_v24 = vld [vmem:[%s2505_s16 + $0xa8] sm:$0xff]   ;;  %v2388_v25 = vld [vmem:[%s2505_s16 + $0x40] sm:$0xff]   ;;  %v2390_v27 = vld [vmem:[%s2505_s16 + $0xf8] sm:$0xff]   ;;  %v1460_v28 = vpack.c.bf16 %v2049_v13, %v2049_v13 }
 0x285   : > { %v1297_v17 = vpack.c.bf16 %v1293_v12, %v1293_v12  ;;  %v2389_v26 = vld [vmem:[%s2505_s16 + $0xa0] sm:$0xff]   ;;  %v2391_v29 = vld [vmem:[%s2505_s16 + $0x158] sm:$0xff]   ;;  %v2765_v49 = vld.sshfl [vmem:[%s2733_s22 + $0x8] sm:$0x33 pattern:$0x76325410] }
 0x286   : > { %1406 = vmatpush1.bf16.msra.mxu0 %v2370_v0  ;;  %1569 = vmatpush1.bf16.msra.mxu1 %v2371_v1  ;;  %v1461_v19 = vpack.c.bf16 %v1457_v15, %v1457_v15  ;;  %v2392_v30 = vld [vmem:[%s2505_s16 + $0xf0] sm:$0xff]   ;;  %v1620_v31 = vcombine.high %v2765_v49, %v2765_v49  ;;  %v2771_v32 = vld.sshfl [vmem:[%s2733_s22 + $0xc] sm:$0x33 pattern:$0x76325410]  ;;  %v2396_v38 = vld [vmem:[%s2505_s16 + $0xe0] sm:$0xff]   ;;  %v1623_v60 = vpack.c.bf16 %v2765_v49, %v2765_v49 }
 0x287   : > { %1407 = vmatprep.subr.bf16.mxu0 %v2437_v61  ;;  %1570 = vmatprep.subr.bf16.mxu1 %v2437_v61  ;;  %v2393_v33 = vld [vmem:[%s2505_s16 + $0x150] sm:$0xff]   ;;  %v1783_v34 = vcombine.high %v2771_v32, %v2771_v32  ;;  %v2394_v37 = vld [vmem:[%s2505_s16 + $0xe8] sm:$0xff]   ;;  %v2397_v39 = vld [vmem:[%s2505_s16 + $0x140] sm:$0xff]   ;;  %v1786_v0 = vpack.c.bf16 %v2771_v32, %v2771_v32 }
 0x288   : > { %2045 = vmatprep.mubr.msk.bf16.mxu0 %vm1393_vm11, %v1297_v17  ;;  %2086 = vmatprep.mubr.msk.bf16.mxu1 %vm1393_vm11, %v1461_v19  ;;  %v1624_v35 = vpack.c.bf16 %v1620_v31, %v1620_v31  ;;  %v2395_v46 = vld [vmem:[%s2505_s16 + $0x148] sm:$0xff]   ;;  %v2398_v40 = vld [vmem:[%s2505_s16 + $0xd8] sm:$0xff]   ;;  %v2400_v42 = vld [vmem:[%s2505_s16 + $0xd0] sm:$0xff]  }
 0x289   : > { %v1787_v36 = vpack.c.bf16 %v1783_v34, %v1783_v34  ;;  %v2399_v41 = vld [vmem:[%s2505_s16 + $0x138] sm:$0xff]   ;;  %v2401_v43 = vld [vmem:[%s2505_s16 + $0x130] sm:$0xff]   ;;  %v2402_v47 = vld [vmem:[%s2505_s16 + $0xc8] sm:$0xff]  }
 0x28a   : > { %1408 = vmatpush1.bf16.msra.mxu0 %v2372_v2  ;;  %1571 = vmatpush1.bf16.msra.mxu1 %v2373_v3  ;;  %v2403_v50 = vld [vmem:[%s2505_s16 + $0x128] sm:$0xff]   ;;  %v2404_v51 = vld [vmem:[%s2505_s16 + $0xc0] sm:$0xff]   ;;  %v2406_v53 = vld [vmem:[%s2505_s16 + $0x118] sm:$0x3f]  }
 0x28b   : > { %1409 = vmatprep.subr.bf16.mxu0 %v2437_v61  ;;  %1572 = vmatprep.subr.bf16.mxu1 %v2437_v61  ;;  %v2405_v52 = vld [vmem:[%s2505_s16 + $0x120] sm:$0xff]   ;;  %v2407_v54 = vld [vmem:[%s2505_s16 + $0x178] sm:$0x3f]   ;;  %v1725_v55 = vsel %vm1397_vm10, %v2406_v53, 0  ;;  %v2408_v57 = vld [vmem:[%s2505_s16 + $0x110] sm:$0xff]  }
 0x28c   : > { %v1888_v56 = vsel %vm1397_vm10, %v2407_v54, 0  ;;  %v2409_v58 = vld [vmem:[%s2505_s16 + $0x170] sm:$0xff]   ;;  %v2410_v59 = vld [vmem:[%s2505_s16 + $0x108] sm:$0xff]   ;;  %v2412_v62 = vld [vmem:[%s2505_s16 + $0x100] sm:$0xff]  }
 0x28d   : > { %v2411_v44 = vld [vmem:[%s2505_s16 + $0x168] sm:$0xff]   ;;  %v2413_v63 = vld [vmem:[%s2505_s16 + $0x160] sm:$0xff]  }
 0x28e   : > { %1410 = vmatpush1.bf16.msra.mxu0 %v2374_v4  ;;  %1573 = vmatpush1.bf16.msra.mxu1 %v2375_v5  ;;  %v1284_v1 = vld [vmem:[#allocation3] sm:$0x3] }
 0x28f   : > { %1411 = vmatprep.subr.bf16.mxu0 %v2437_v61  ;;  %1574 = vmatprep.subr.bf16.mxu1 %v2437_v61 }
 0x292   : > { %1412 = vmatpush1.bf16.msra.mxu0 %v2376_v6  ;;  %1575 = vmatpush1.bf16.msra.mxu1 %v2377_v7 }
 0x293   : > { %1413 = vmatprep.subr.bf16.mxu0 %v2437_v61  ;;  %1576 = vmatprep.subr.bf16.mxu1 %v2437_v61 }
 0x296   : > { %1414 = vmatpush1.bf16.msra.mxu0 %v2378_v8  ;;  %1577 = vmatpush1.bf16.msra.mxu1 %v2379_v9 }
 0x297   : > { %1415 = vmatprep.subr.bf16.mxu0 %v2437_v61  ;;  %1578 = vmatprep.subr.bf16.mxu1 %v2437_v61 }
 0x29a   : > { %1416 = vmatpush1.bf16.msra.mxu0 %v2380_v10  ;;  %1579 = vmatpush1.bf16.msra.mxu1 %v2381_v14 }
 0x29b   : > { %1425 = vmatprep.subr.bf16.mxu0 %v2437_v61  ;;  %1588 = vmatprep.subr.bf16.mxu1 %v2437_v61 }
 0x29e   : > { %1426 = vmatpush2.bf16.msra.mxu0 %v1399_v20  ;;  %1589 = vmatpush2.bf16.msra.mxu1 %v1562_v21 }
 0x29f   : > { %1427 = vmatprep.subr.bf16.mxu0 %v2437_v61  ;;  %1590 = vmatprep.subr.bf16.mxu1 %v2437_v61 }
 0x2a2   : > { %1428 = vmatpush2.bf16.msra.mxu0 %v2384_v22  ;;  %1591 = vmatpush2.bf16.msra.mxu1 %v2385_v23 }
 0x2a3   : > { %1429 = vmatprep.subr.bf16.mxu0 %v2437_v61  ;;  %1592 = vmatprep.subr.bf16.mxu1 %v2437_v61 }
 0x2a6   : > { %1430 = vmatpush2.bf16.msra.mxu0 %v2386_v48  ;;  %1593 = vmatpush2.bf16.msra.mxu1 %v2387_v24 }
 0x2a7   : > { %1431 = vmatprep.subr.bf16.mxu0 %v2437_v61  ;;  %1594 = vmatprep.subr.bf16.mxu1 %v2437_v61 }
 0x2aa   : > { %1432 = vmatpush2.bf16.msra.mxu0 %v2388_v25  ;;  %1595 = vmatpush2.bf16.msra.mxu1 %v2389_v26 }
 0x2ab   : > { %1727 = vmatprep.subr.bf16.mxu0 %v2437_v61  ;;  %1890 = vmatprep.subr.bf16.mxu1 %v2437_v61 }
 0x2ad   : > { %1434 = vmatmul.mubr.bf16.vlgmr.msra.gmra.mxu0 %v1296_v45  ;;  %1597 = vmatmul.mubr.bf16.vlgmr.msra.gmra.mxu1 %v1460_v28 }
 0x2ae   : > { %1728 = vmatpush1.bf16.msra.mxu0 %v2390_v27  ;;  %1891 = vmatpush1.bf16.msra.mxu1 %v2391_v29 }
 0x2af   : > { %1729 = vmatprep.subr.bf16.mxu0 %v2437_v61  ;;  %1892 = vmatprep.subr.bf16.mxu1 %v2437_v61 }
 0x2b0   : > { %2127 = vmatprep.mubr.msk.bf16.mxu0 %vm1393_vm11, %v1624_v35  ;;  %2168 = vmatprep.mubr.msk.bf16.mxu1 %vm1393_vm11, %v1787_v36 }
 0x2b2   : > { %1730 = vmatpush1.bf16.msra.mxu0 %v2392_v30  ;;  %1893 = vmatpush1.bf16.msra.mxu1 %v2393_v33 }
 0x2b3   : > { %1731 = vmatprep.subr.bf16.mxu0 %v2437_v61  ;;  %1894 = vmatprep.subr.bf16.mxu1 %v2437_v61 }
 0x2b6   : > { %1732 = vmatpush1.bf16.msra.mxu0 %v2394_v37  ;;  %1895 = vmatpush1.bf16.msra.mxu1 %v2395_v46 }
 0x2b7   : > { %1733 = vmatprep.subr.bf16.mxu0 %v2437_v61  ;;  %1896 = vmatprep.subr.bf16.mxu1 %v2437_v61 }
 0x2ba   : > { %1734 = vmatpush1.bf16.msra.mxu0 %v2396_v38  ;;  %1897 = vmatpush1.bf16.msra.mxu1 %v2397_v39 }
 0x2bb   : > { %1735 = vmatprep.subr.bf16.mxu0 %v2437_v61  ;;  %1898 = vmatprep.subr.bf16.mxu1 %v2437_v61 }
 0x2be   : > { %1736 = vmatpush1.bf16.msra.mxu0 %v2398_v40  ;;  %1899 = vmatpush1.bf16.msra.mxu1 %v2399_v41 }
 0x2bf   : > { %1737 = vmatprep.subr.bf16.mxu0 %v2437_v61  ;;  %1900 = vmatprep.subr.bf16.mxu1 %v2437_v61 }
 0x2c2   : > { %1738 = vmatpush1.bf16.msra.mxu0 %v2400_v42  ;;  %1901 = vmatpush1.bf16.msra.mxu1 %v2401_v43 }
 0x2c3   : > { %1739 = vmatprep.subr.bf16.mxu0 %v2437_v61  ;;  %1902 = vmatprep.subr.bf16.mxu1 %v2437_v61 }
 0x2c6   : > { %1740 = vmatpush1.bf16.msra.mxu0 %v2402_v47  ;;  %1903 = vmatpush1.bf16.msra.mxu1 %v2403_v50 }
 0x2c7   : > { %1741 = vmatprep.subr.bf16.mxu0 %v2437_v61  ;;  %1904 = vmatprep.subr.bf16.mxu1 %v2437_v61 }
 0x2ca   : > { %1742 = vmatpush1.bf16.msra.mxu0 %v2404_v51  ;;  %1905 = vmatpush1.bf16.msra.mxu1 %v2405_v52 }
 0x2cb   : > { %1751 = vmatprep.subr.bf16.mxu0 %v2437_v61  ;;  %1914 = vmatprep.subr.bf16.mxu1 %v2437_v61 }
 0x2ce   : > { %1752 = vmatpush2.bf16.msra.mxu0 %v1725_v55  ;;  %1915 = vmatpush2.bf16.msra.mxu1 %v1888_v56 }
 0x2cf   : > { %1753 = vmatprep.subr.bf16.mxu0 %v2437_v61  ;;  %1916 = vmatprep.subr.bf16.mxu1 %v2437_v61 }
 0x2d2   : > { %1754 = vmatpush2.bf16.msra.mxu0 %v2408_v57  ;;  %1917 = vmatpush2.bf16.msra.mxu1 %v2409_v58 }
 0x2d3   : > { %1755 = vmatprep.subr.bf16.mxu0 %v2437_v61  ;;  %1918 = vmatprep.subr.bf16.mxu1 %v2437_v61 }
 0x2d6   : > { %1756 = vmatpush2.bf16.msra.mxu0 %v2410_v59  ;;  %1919 = vmatpush2.bf16.msra.mxu1 %v2411_v44 }
 0x2d7   : > { %1757 = vmatprep.subr.bf16.mxu0 %v2437_v61  ;;  %1920 = vmatprep.subr.bf16.mxu1 %v2437_v61 }
 0x2da   : > { %1758 = vmatpush2.bf16.msra.mxu0 %v2412_v62  ;;  %1921 = vmatpush2.bf16.msra.mxu1 %v2413_v63 }
 0x2dd   : > { %1760 = vmatmul.mubr.bf16.vlgmr.msra.gmra.mxu0 %v1623_v60  ;;  %1923 = vmatmul.mubr.bf16.vlgmr.msra.gmra.mxu1 %v1786_v0 }
 0x36d   : > { %v1435_v2 = vpop.f32.mrf.mxu0  ;;  %v1598_v4 = vpop.f32.mrf.mxu1 }
 0x36e   : > { %v1441_v3 = vadd.f32 %v1435_v2, %v1284_v1 }
 0x36f   : > { %v1437_v5 = vpop.f32.mrf.mxu0  ;;  %v1600_v6 = vpop.f32.mrf.mxu1 }
 0x370   : > { %1442 = vst [vmem:[#allocation3] sm:$0x3] %v1441_v3 }
 0x371   : > { %v1438_v7 = vpop.f32.mrf.mxu0  ;;  %v1601_v8 = vpop.f32.mrf.mxu1 }
 0x373   : > { %v1439_v61 = vpop.f32.mrf.mxu0  ;;  %v1602_v9 = vpop.f32.mrf.mxu1 }
 0x377   : > { %v1448_v10 = vld [vmem:[#allocation3] sm:$0x3] }
 0x378   : > { %v1604_v11 = vadd.f32 %v1598_v4, %v1448_v10 }
 0x37a   : > { %1605 = vst [vmem:[#allocation3] sm:$0x3] %v1604_v11 }
 0x381   : > { %v1611_v12 = vld [vmem:[#allocation3] sm:$0x3] }
 0x39d   : > { %v1761_v13 = vpop.f32.mrf.mxu0  ;;  %v1924_v15 = vpop.f32.mrf.mxu1 }
 0x39e   : > { %v1767_v14 = vadd.f32 %v1761_v13, %v1611_v12 }
 0x39f   : > { %v1763_v16 = vpop.f32.mrf.mxu0  ;;  %v1926_v17 = vpop.f32.mrf.mxu1 }
 0x3a0   : > { %1768 = vst [vmem:[#allocation3] sm:$0x3] %v1767_v14 }
 0x3a1   : > { %v1764_v18 = vpop.f32.mrf.mxu0  ;;  %v1927_v19 = vpop.f32.mrf.mxu1 }
 0x3a3   : > { %v1765_v20 = vpop.f32.mrf.mxu0  ;;  %v1928_v21 = vpop.f32.mrf.mxu1 }
 0x3a6   : > { %1935 = sbr.rel (%p2169_p5) target bundleno = 1122 (0x462), region = 64 }
 0x3a7   : > { %v1774_v22 = vld [vmem:[#allocation3] sm:$0x3] }
 0x3a8   : > { %v1930_v23 = vadd.f32 %v1924_v15, %v1774_v22 }
 0x3aa   : > { %1931 = vst [vmem:[#allocation3] sm:$0x3] %v1930_v23 }
 0x3ab   : > { %v2170_v24 = vld [vmem:[%s2843_s7] ss:$0 sm:$0xff]  ;;  %vm1945_vm12 = vcmask 1041408   ;;  %v2171_v45 = vld [vmem:[#allocation4] ss:$0 sm:$0xff]  ;;  %vm1963_vm13 = vcmask 1024  }
 0x3b1   : > { %v1936_v48 = vld [vmem:[#allocation3] sm:$0x3] }
 0x3b2   : > { %v1944_v25 = vmul.f32 %v2170_v24, %v1936_v48 }
 0x3b4   : > { %v1946_v26 = vsel %vm1945_vm12, %v1944_v25, 0.0 }
 0x3b5   : > { %1947 = vadd.xlane.f32.xlu0 %v1946_v26 }
 0x43e   : > { %v1948_v27 = vpop.xlane.xlu0 %1947 }
 0x43f   : > { %v1956_v28 = vadd.f32 %v2171_v45, %v1948_v27 }
 0x441   : > { %v2172_v29 = vmul.f32 -1.442695, %v1956_v28 }
 0x443   : > { %2414 = vpow2.f32 %v2172_v29 }
 0x450   : > { %v2415_v49 = vpop.eup %2414 }
 0x451   : > { %v1960_v30 = vadd.f32 1.0, %v2415_v49 }
 0x453   : > { %2416 = vrcp.f32 %v1960_v30 }
 0x460   : > { %v2417_v31 = vpop.eup %2416 }
 0x461   : > { %1964 = vst.msk [vmem:[%s2845_s9] sm:$0x3] %vm1963_vm13, %v2417_v31 }
 0x462 PF: > { %s21_s11 = sadd.s32 1, %s2424_s11  }
 0x463   : > { %p18_p6 = scmp.ge.s32.totalorder %s21_s11, 6  }
 0x465   :  { %20 = sbr.rel (!%p18_p6) target bundleno = 3 (0x3), region = 129 }

</bundles_post_ra>
